<compile_context>
chip_gen: v7x
topology: tpu7x:2x2x1
jax: 0.10.0
libtpu: 0.0.40
codegen_flags: <defaults>
</compile_context>

<pallas_src>
import functools
import math

import jax
import jax.numpy as jnp
from jax.experimental import pallas as pl
from jax.experimental.pallas import tpu as pltpu


# ------------------------------ sizing helpers ------------------------------ #

@functools.lru_cache(maxsize=None)
def _vmem_limit():
    """Generation-aware scoped-VMEM budget (v7x: 32 MiB, v5e/v6e: 48 MiB)."""
    try:
        cap = int(pltpu.get_tpu_info().vmem_capacity_bytes)
    except Exception:
        cap = 64 * 1024 * 1024
    return int(min(cap // 2, 48 * 1024 * 1024))


def _pick_tile(n, candidates):
    """Largest candidate tile that evenly divides n, else the full dim."""
    for c in candidates:
        if n >= c and n % c == 0:
            return c
    return n


_ROW_TILES = (256, 128, 64, 32, 16, 8)   # sublane-dim tiles (multiples of 8)


def _col_tiles():
    # v7x (64 MiB VMEM): cap lane-dim tiles at 256; v5e/v6e (128 MiB): allow 512.
    return (256, 128) if _vmem_limit() <= 32 * 1024 * 1024 else (512, 256, 128)


# ----------------------------- Pallas kernels ------------------------------- #

def _rms_matmul_kernel(x_ref, nw_ref, w_ref, o_ref, xn_ref, *, eps):
    """Fused RMSNorm(x) @ W.  xn is computed once per row tile (j == 0) into a
    VMEM scratch and reused for every column tile (f32 statistics)."""
    j = pl.program_id(1)

    @pl.when(j == 0)
    def _():
        x = x_ref[...].astype(jnp.float32)
        ms = jnp.mean(x * x, axis=-1, keepdims=True)
        xn = x * jax.lax.rsqrt(ms + eps) * nw_ref[...].astype(jnp.float32)
        xn_ref[...] = xn.astype(xn_ref.dtype)

    o_ref[...] = jnp.dot(xn_ref[...], w_ref[...],
                         preferred_element_type=jnp.float32).astype(o_ref.dtype)


def _matmul_residual_kernel(x_ref, w_ref, r_ref, o_ref, acc_ref):
    """o = x @ W + residual, tiled over the contraction axis (grid axis 2) with
    an f32 VMEM accumulator; residual add fused into the finalize."""
    k = pl.program_id(2)

    @pl.when(k == 0)
    def _():
        acc_ref[...] = jnp.zeros(acc_ref.shape, jnp.float32)

    acc_ref[...] += jnp.dot(x_ref[...], w_ref[...],
                            preferred_element_type=jnp.float32)

    @pl.when(k == pl.num_programs(2) - 1)
    def _():
        o_ref[...] = (r_ref[...].astype(jnp.float32) + acc_ref[...]
                      ).astype(o_ref.dtype)


def _ffn_kernel(h_ref, nw_ref, w1_ref, w3_ref, w2_ref, o_ref, xn_ref, acc_ref,
                *, eps):
    """Fused RMSNorm + SwiGLU FFN tiled over the hidden dim (grid axis 1).
    xn cached once per row tile; partial g @ w2 accumulated in f32 VMEM
    (kept as a separate scratch — o_ref may be bf16); residual fused."""
    j = pl.program_id(1)

    @pl.when(j == 0)
    def _():
        h = h_ref[...].astype(jnp.float32)
        ms = jnp.mean(h * h, axis=-1, keepdims=True)
        xn = h * jax.lax.rsqrt(ms + eps) * nw_ref[...].astype(jnp.float32)
        xn_ref[...] = xn.astype(xn_ref.dtype)
        acc_ref[...] = jnp.zeros(acc_ref.shape, jnp.float32)

    xn = xn_ref[...]
    h1 = jnp.dot(xn, w1_ref[...], preferred_element_type=jnp.float32)
    h3 = jnp.dot(xn, w3_ref[...], preferred_element_type=jnp.float32)
    g = (jax.nn.silu(h1) * h3).astype(w2_ref.dtype)
    acc_ref[...] += jnp.dot(g, w2_ref[...], preferred_element_type=jnp.float32)

    @pl.when(j == pl.num_programs(1) - 1)
    def _():
        o_ref[...] = (h_ref[...].astype(jnp.float32) + acc_ref[...]
                      ).astype(o_ref.dtype)


def _flash_attn_kernel(q_ref, k_ref, v_ref, mask_ref, o_ref,
                       m_sc, l_sc, acc_sc, *, scale):
    """Flash-style attention for one (batch, KV-head) pair, streaming the cache
    in T-tiles (grid axis 2) with online-softmax f32 m/l/acc scratch.

    q_ref:    (1, 1, S*R, Dh)  query heads sharing this KV head, (s, r) row order
    k_ref/v_ref: (1, 1, tk, Dh)
    mask_ref: (S*R, tk)        additive mask (row-expanded to match q rows)
    o_ref:    (1, 1, S*R, Dh)
    """
    t = pl.program_id(2)

    @pl.when(t == 0)
    def _():
        # Finite (not -inf) init keeps fully-masked T-tiles NaN-free.
        m_sc[...] = jnp.full(m_sc.shape, -1e30, jnp.float32)
        l_sc[...] = jnp.zeros(l_sc.shape, jnp.float32)
        acc_sc[...] = jnp.zeros(acc_sc.shape, jnp.float32)

    q = q_ref[0, 0] * scale                                    # (SR, Dh)
    k = k_ref[0, 0]                                            # (tk, Dh)
    v = v_ref[0, 0]

    # Q @ K^T via dot_general (no in-kernel transpose of K).
    s = jax.lax.dot_general(q, k, (((1,), (1,)), ((), ())),
                            preferred_element_type=jnp.float32)  # (SR, tk)
    s = s + mask_ref[...]

    m_prev = m_sc[...]
    m_new = jnp.maximum(m_prev, jnp.max(s, axis=-1, keepdims=True))
    alpha = jnp.exp(m_prev - m_new)
    p = jnp.exp(s - m_new)
    l_sc[...] = alpha * l_sc[...] + jnp.sum(p, axis=-1, keepdims=True)
    acc_sc[...] = alpha * acc_sc[...] + jnp.dot(
        p.astype(v.dtype), v, preferred_element_type=jnp.float32)
    m_sc[...] = m_new

    @pl.when(t == pl.num_programs(2) - 1)
    def _():
        o_ref[0, 0] = (acc_sc[...] *
                       pl.reciprocal(l_sc[...], approx=True)).astype(o_ref.dtype)


# ----------------------------- kernel wrappers ------------------------------ #

def rmsnorm_matmul(x, norm_w, w, *, eps):
    M, D = x.shape
    N = w.shape[1]
    tm = _pick_tile(M, _ROW_TILES)
    tn = _pick_tile(N, _col_tiles())
    return pl.pallas_call(
        functools.partial(_rms_matmul_kernel, eps=eps),
        out_shape=jax.ShapeDtypeStruct((M, N), x.dtype),
        grid=(M // tm, N // tn),
        in_specs=[pl.BlockSpec((tm, D), lambda i, j: (i, 0)),
                  pl.BlockSpec((1, D), lambda i, j: (0, 0)),
                  pl.BlockSpec((D, tn), lambda i, j: (0, j))],
        out_specs=pl.BlockSpec((tm, tn), lambda i, j: (i, j)),
        scratch_shapes=[pltpu.VMEM((tm, D), x.dtype)],
        compiler_params=pltpu.CompilerParams(
            dimension_semantics=("parallel", "arbitrary"),
            vmem_limit_bytes=_vmem_limit()),
    )(x, norm_w.reshape(1, D).astype(x.dtype), w)


def matmul_residual(x, w, res):
    M, K = x.shape
    N = w.shape[1]
    tm = _pick_tile(M, _ROW_TILES)
    tn = _pick_tile(N, _col_tiles())
    tk = _pick_tile(K, (512, 256, 128))
    return pl.pallas_call(
        _matmul_residual_kernel,
        out_shape=jax.ShapeDtypeStruct((M, N), x.dtype),
        grid=(M // tm, N // tn, K // tk),
        in_specs=[pl.BlockSpec((tm, tk), lambda i, j, k: (i, k)),
                  pl.BlockSpec((tk, tn), lambda i, j, k: (k, j)),
                  pl.BlockSpec((tm, tn), lambda i, j, k: (i, j))],
        out_specs=pl.BlockSpec((tm, tn), lambda i, j, k: (i, j)),
        scratch_shapes=[pltpu.VMEM((tm, tn), jnp.float32)],
        compiler_params=pltpu.CompilerParams(
            dimension_semantics=("parallel", "parallel", "arbitrary"),
            vmem_limit_bytes=_vmem_limit()),
    )(x, w, res)


def feed_forward(h, norm_w, w1, w3, w2, *, eps, ffn_block=None):
    M, D = h.shape
    H = w1.shape[1]
    tm = _pick_tile(M, _ROW_TILES)
    th = ffn_block if ffn_block is not None else _pick_tile(H, _col_tiles())
    assert H % th == 0
    return pl.pallas_call(
        functools.partial(_ffn_kernel, eps=eps),
        out_shape=jax.ShapeDtypeStruct((M, D), h.dtype),
        grid=(M // tm, H // th),
        in_specs=[pl.BlockSpec((tm, D), lambda i, j: (i, 0)),
                  pl.BlockSpec((1, D), lambda i, j: (0, 0)),
                  pl.BlockSpec((D, th), lambda i, j: (0, j)),
                  pl.BlockSpec((D, th), lambda i, j: (0, j)),
                  pl.BlockSpec((th, D), lambda i, j: (j, 0))],
        out_specs=pl.BlockSpec((tm, D), lambda i, j: (i, 0)),
        scratch_shapes=[pltpu.VMEM((tm, D), h.dtype),       # cached xn
                        pltpu.VMEM((tm, D), jnp.float32)],  # f32 accumulator
        compiler_params=pltpu.CompilerParams(
            dimension_semantics=("parallel", "arbitrary"),
            vmem_limit_bytes=_vmem_limit()),
    )(h, norm_w.reshape(1, D).astype(h.dtype), w1, w3, w2)


def flash_attention(xq_g, cache_k, cache_v, mask_sr, *, scale, kv_block=None):
    # xq_g: (B, Hk, S*R, Dh) grouped queries; cache_k/v: (B, Hk, T, Dh);
    # mask_sr: (S*R, T) additive mask expanded to the query-row order.
    B, Hk, SR, Dh = xq_g.shape
    T = cache_k.shape[2]
    if kv_block is None:
        kv_block = _pick_tile(T, (512, 256, 128))
    assert T % kv_block == 0
    return pl.pallas_call(
        functools.partial(_flash_attn_kernel, scale=scale),
        out_shape=jax.ShapeDtypeStruct((B, Hk, SR, Dh), xq_g.dtype),
        grid=(B, Hk, T // kv_block),
        in_specs=[pl.BlockSpec((1, 1, SR, Dh), lambda b, g, t: (b, g, 0, 0)),
                  pl.BlockSpec((1, 1, kv_block, Dh), lambda b, g, t: (b, g, t, 0)),
                  pl.BlockSpec((1, 1, kv_block, Dh), lambda b, g, t: (b, g, t, 0)),
                  pl.BlockSpec((SR, kv_block), lambda b, g, t: (0, t))],
        out_specs=pl.BlockSpec((1, 1, SR, Dh), lambda b, g, t: (b, g, 0, 0)),
        scratch_shapes=[pltpu.VMEM((SR, 1), jnp.float32),    # running max
                        pltpu.VMEM((SR, 1), jnp.float32),    # running sum
                        pltpu.VMEM((SR, Dh), jnp.float32)],  # output accumulator
        compiler_params=pltpu.CompilerParams(
            dimension_semantics=("parallel", "parallel", "arbitrary"),
            vmem_limit_bytes=_vmem_limit()),
    )(xq_g, cache_k, cache_v, mask_sr)


# ------------------------------- JAX "glue" --------------------------------- #

def apply_rotary_emb(xq, xk, cos, sin):
    """LLaMA interleaved RoPE; rotation math in f32, result cast back."""
    def rot(x):
        dtype = x.dtype
        B, S, H, D = x.shape
        xf = x.astype(jnp.float32).reshape(B, S, H, D // 2, 2)
        x_re, x_im = xf[..., 0], xf[..., 1]
        c = cos[None, :, None, :]
        s = sin[None, :, None, :]
        o_re = x_re * c - x_im * s
        o_im = x_re * s + x_im * c
        return jnp.stack([o_re, o_im], axis=-1).reshape(B, S, H, D).astype(dtype)
    return rot(xq), rot(xk)


def repeat_kv(x, n_rep):
    # Only used by the pure-JAX reference; the Pallas path never materializes it.
    if n_rep == 1:
        return x
    B, T, Hk, Dh = x.shape
    return jnp.broadcast_to(x[:, :, :, None, :],
                            (B, T, Hk, n_rep, Dh)).reshape(B, T, Hk * n_rep, Dh)


def transformer_block(x, params, cos, sin, mask, input_indexes, cache_k, cache_v,
                      *, n_heads, n_kv_heads, head_dim, norm_eps,
                      kv_block=None, ffn_block=None):
    """Pallas TransformerBlock forward.  Caches are head-major (B, Hk, T, Dh) and
    are expected to be donated under jit (in-place row update)."""
    B, S, D = x.shape
    n_rep = n_heads // n_kv_heads
    Nq = n_heads * head_dim
    Nk = n_kv_heads * head_dim
    cdtype = params["wqkv"].dtype
    x2d = x.reshape(B * S, D).astype(cdtype)

    # Fused RMSNorm + concatenated QKV projection.
    qkv = rmsnorm_matmul(x2d, params["attn_norm_w"], params["wqkv"], eps=norm_eps)
    xq = qkv[:, :Nq].reshape(B, S, n_heads, head_dim)
    xk = qkv[:, Nq:Nq + Nk].reshape(B, S, n_kv_heads, head_dim)
    xv = qkv[:, Nq + Nk:].reshape(B, S, n_kv_heads, head_dim)

    xq, xk = apply_rotary_emb(xq, xk, cos, sin)

    # Head-major KV-cache row write (donated buffers -> in-place).
    cache_k = cache_k.at[:, :, input_indexes, :].set(
        jnp.transpose(xk, (0, 2, 1, 3)).astype(cache_k.dtype))
    cache_v = cache_v.at[:, :, input_indexes, :].set(
        jnp.transpose(xv, (0, 2, 1, 3)).astype(cache_v.dtype))

    # Group the n_rep query heads that share each KV head; row order (s, r).
    xq_g = (xq.reshape(B, S, n_kv_heads, n_rep, head_dim)
              .transpose(0, 2, 1, 3, 4)
              .reshape(B, n_kv_heads, S * n_rep, head_dim).astype(cdtype))
    # Mask expanded to the (s, r) query-row order (no tile inside the kernel).
    mask_sr = jnp.repeat(mask, n_rep, axis=0)

    attn = flash_attention(xq_g, cache_k, cache_v, mask_sr,
                           scale=1.0 / math.sqrt(head_dim), kv_block=kv_block)
    # (B, Hk, S, R, Dh) -> (B*S, Hq*Dh); flattening (Hk, R, Dh) == (Hq, Dh) order.
    attn2d = (attn.reshape(B, n_kv_heads, S, n_rep, head_dim)
                  .transpose(0, 2, 1, 3, 4)
                  .reshape(B * S, Nq))

    # wo projection with residual add fused into the kernel epilogue.
    h = matmul_residual(attn2d, params["wo"], x2d)

    # Fused RMSNorm + SwiGLU + w2 + residual.
    out = feed_forward(h, params["ffn_norm_w"], params["w1"], params["w3"],
                       params["w2"], eps=norm_eps, ffn_block=ffn_block)
    return out.reshape(B, S, D), cache_k, cache_v


# ----------------------------- pure-JAX reference --------------------------- #

def reference_block(x, params, cos, sin, mask, input_indexes, cache_k, cache_v,
                    *, n_heads, n_kv_heads, head_dim, norm_eps):
    def rms(v, w):
        ms = jnp.mean(v * v, axis=-1, keepdims=True)
        return v * jax.lax.rsqrt(ms + norm_eps) * w

    B, S, D = x.shape
    n_rep = n_heads // n_kv_heads
    hn = rms(x, params["attn_norm_w"])
    xq = (hn @ params["wq"]).reshape(B, S, n_heads, head_dim)
    xk = (hn @ params["wk"]).reshape(B, S, n_kv_heads, head_dim)
    xv = (hn @ params["wv"]).reshape(B, S, n_kv_heads, head_dim)
    xq, xk = apply_rotary_emb(xq, xk, cos, sin)
    cache_k = cache_k.at[:, input_indexes].set(xk)
    cache_v = cache_v.at[:, input_indexes].set(xv)
    keys = repeat_kv(cache_k, n_rep).transpose(0, 2, 1, 3)
    values = repeat_kv(cache_v, n_rep).transpose(0, 2, 1, 3)
    q = xq.transpose(0, 2, 1, 3)
    scores = jnp.einsum("bhsd,bhtd->bhst", q, keys) / math.sqrt(head_dim)
    scores = scores + mask[None, None]
    p = jax.nn.softmax(scores, axis=-1)
    o = jnp.einsum("bhst,bhtd->bhsd", p, values)
    o = o.transpose(0, 2, 1, 3).reshape(B, S, n_heads * head_dim)
    h = x + o @ params["wo"]
    hn2 = rms(h, params["ffn_norm_w"])
    h1 = hn2 @ params["w1"]
    ffn = (jax.nn.silu(h1) * (hn2 @ params["w3"])) @ params["w2"]
    return h + ffn


# ----------------------------------- main ------------------------------------ #

if __name__ == "__main__":
    # Small ModelArgs-consistent configuration (sized so the flash T-tiling and
    # the FFN hidden-dim accumulation both execute multiple grid steps).
    dim = 64
    n_heads = 4
    n_kv_heads = 2
    head_dim = dim // n_heads          # 16
    multiple_of = 128
    norm_eps = 1e-5
    max_batch_size = 2
    max_seq_len = 256                  # cache length T (2 T-tiles of 128)
    B, S = 2, 8

    # FeedForward hidden dim: int(2*4*dim/3) rounded up to multiple_of -> 256.
    hidden_dim = int(2 * (4 * dim) / 3)
    hidden_dim = multiple_of * ((hidden_dim + multiple_of - 1) // multiple_of)

    key = jax.random.PRNGKey(0)
    ks = jax.random.split(key, 10)
    wscale = 0.05
    params = {
        "attn_norm_w": jnp.ones((dim,), jnp.float32),
        "ffn_norm_w": jnp.ones((dim,), jnp.float32),
        "wq": jax.random.normal(ks[0], (dim, n_heads * head_dim), jnp.float32) * wscale,
        "wk": jax.random.normal(ks[1], (dim, n_kv_heads * head_dim), jnp.float32) * wscale,
        "wv": jax.random.normal(ks[2], (dim, n_kv_heads * head_dim), jnp.float32) * wscale,
        "wo": jax.random.normal(ks[3], (n_heads * head_dim, dim), jnp.float32) * wscale,
        "w1": jax.random.normal(ks[4], (dim, hidden_dim), jnp.float32) * wscale,
        "w3": jax.random.normal(ks[5], (dim, hidden_dim), jnp.float32) * wscale,
        "w2": jax.random.normal(ks[6], (hidden_dim, dim), jnp.float32) * wscale,
    }
    params["wqkv"] = jnp.concatenate([params["wq"], params["wk"], params["wv"]], axis=1)
    params_bf16 = jax.tree.map(lambda a: a.astype(jnp.bfloat16), params)

    x = jax.random.normal(ks[7], (B, S, dim), jnp.float32)
    input_indexes = jnp.arange(S, dtype=jnp.int32)     # prefill at positions 0..S-1

    # freqs_cis (cos/sin) as in LLaMA precompute_freqs_cis, sliced to positions.
    inv_freq = 1.0 / (10000.0 ** (jnp.arange(0, head_dim, 2, dtype=jnp.float32) / head_dim))
    angles = jnp.outer(input_indexes.astype(jnp.float32), inv_freq)  # (S, Dh//2)
    cos, sin = jnp.cos(angles), jnp.sin(angles)

    # Causal mask over the full cache length (unwritten cache slots masked).
    pos = input_indexes[:, None]
    jcol = jnp.arange(max_seq_len, dtype=jnp.int32)[None, :]
    mask = jnp.where(jcol <= pos, 0.0, -jnp.inf).astype(jnp.float32)  # (S, T)

    # Pure-JAX reference (token-major cache layout, matching the PyTorch module).
    ref_cache_k = jnp.zeros((max_batch_size, max_seq_len, n_kv_heads, head_dim), jnp.float32)
    ref_cache_v = jnp.zeros_like(ref_cache_k)
    ref = reference_block(
        x, params, cos, sin, mask, input_indexes, ref_cache_k, ref_cache_v,
        n_heads=n_heads, n_kv_heads=n_kv_heads, head_dim=head_dim, norm_eps=norm_eps)
    ref = jax.block_until_ready(ref)

    block_fn = jax.jit(
        functools.partial(transformer_block,
                          n_heads=n_heads, n_kv_heads=n_kv_heads,
                          head_dim=head_dim, norm_eps=norm_eps,
                          kv_block=128, ffn_block=128),
        donate_argnums=(6, 7))          # donate cache_k / cache_v -> in-place update

    # --- f32 run: tight parity with the reference -------------------------------
    cache_k = jnp.zeros((max_batch_size, n_kv_heads, max_seq_len, head_dim), jnp.float32)
    cache_v = jnp.zeros_like(cache_k)
    out_f32, _, _ = block_fn(x, params, cos, sin, mask, input_indexes, cache_k, cache_v)
    out_f32 = jax.block_until_ready(out_f32)
    assert out_f32.shape == (B, S, dim)
    assert jnp.allclose(out_f32, ref, atol=2e-3, rtol=2e-3), "f32 mismatch vs reference"

    # --- bf16 run: production dtype path (f32 accumulation / stats inside) ------
    cache_k_bf = jnp.zeros((max_batch_size, n_kv_heads, max_seq_len, head_dim), jnp.bfloat16)
    cache_v_bf = jnp.zeros_like(cache_k_bf)
    out_bf16, _, _ = block_fn(x, params_bf16, cos, sin, mask, input_indexes,
                              cache_k_bf, cache_v_bf)
    out_bf16 = jax.block_until_ready(out_bf16)
    assert out_bf16.shape == (B, S, dim)
    assert jnp.allclose(out_bf16.astype(jnp.float32), ref, atol=1e-1, rtol=1e-1), \
        "bf16 mismatch vs reference"

    print("KERNEL_OK")
</pallas_src>

<mosaic_0001>
module attributes {stable_mosaic.version = 11 : i64} {
  func.func @_rms_matmul_kernel(%arg0: i32, %arg1: i32, %arg2: memref<16x64xf32, #tpu.memory_space<vmem>>, %arg3: memref<1x64xf32, #tpu.memory_space<vmem>>, %arg4: memref<64x128xf32, #tpu.memory_space<vmem>>, %arg5: memref<16x128xf32, #tpu.memory_space<vmem>>, %arg6: memref<16x64xf32, #tpu.memory_space<vmem>>) attributes {dimension_semantics = [#tpu.dimension_semantics<parallel>, #tpu.dimension_semantics<arbitrary>], iteration_bounds = array<i64: 1, 1>, scalar_prefetch = 0 : i64, scratch_operands = 1 : i64, tpu.core_type = #tpu.core_type<tc>, window_params = [{transform_indices = @transform_0, window_bounds = array<i64: 16, 64>}, {pipeline_mode = #tpu.pipeline_mode<synchronous>, transform_indices = @transform_1, window_bounds = array<i64: 1, 64>}, {transform_indices = @transform_2, window_bounds = array<i64: 64, 128>}, {transform_indices = @transform_3, window_bounds = array<i64: 16, 128>}]} {
    %c0_i32 = arith.constant 0 : i32
    %0 = arith.cmpi eq, %arg1, %c0_i32 : i32
    %1 = arith.extui %0 : i1 to i32
    %c0_i32_0 = arith.constant 0 : i32
    %2 = arith.cmpi ne, %1, %c0_i32_0 : i32
    scf.if %2 {
      %c0_6 = arith.constant 0 : index
      %c0_7 = arith.constant 0 : index
      %7 = vector.load %arg2[%c0_6, %c0_7] : memref<16x64xf32, #tpu.memory_space<vmem>>, vector<16x64xf32>
      %8 = arith.mulf %7, %7 : vector<16x64xf32>
      %cst_8 = arith.constant dense<0.000000e+00> : vector<16xf32>
      %9 = vector.multi_reduction <add>, %8, %cst_8 [1] : vector<16x64xf32> to vector<16xf32>
      %10 = vector.shape_cast %9 : vector<16xf32> to vector<16x1xf32>
      %cst_9 = arith.constant 6.400000e+01 : f32
      %11 = vector.broadcast %cst_9 : f32 to vector<16x1xf32>
      %12 = arith.divf %10, %11 : vector<16x1xf32>
      %cst_10 = arith.constant 9.99999974E-6 : f32
      %13 = vector.broadcast %cst_10 : f32 to vector<16x1xf32>
      %14 = arith.addf %12, %13 : vector<16x1xf32>
      %15 = math.rsqrt %14 : vector<16x1xf32>
      %16 = vector.broadcast %15 : vector<16x1xf32> to vector<16x64xf32>
      %17 = arith.mulf %7, %16 : vector<16x64xf32>
      %c0_11 = arith.constant 0 : index
      %c0_12 = arith.constant 0 : index
      %18 = vector.load %arg3[%c0_11, %c0_12] : memref<1x64xf32, #tpu.memory_space<vmem>>, vector<1x64xf32>
      %19 = vector.broadcast %18 : vector<1x64xf32> to vector<16x64xf32>
      %20 = arith.mulf %17, %19 : vector<16x64xf32>
      %c0_13 = arith.constant 0 : index
      %c0_14 = arith.constant 0 : index
      %21 = vector.load %arg6[%c0_13, %c0_14] : memref<16x64xf32, #tpu.memory_space<vmem>>, vector<16x64xf32>
      tpu.vector_store %arg6[%c0_13, %c0_14], %20 {strides = array<i32>} : memref<16x64xf32, #tpu.memory_space<vmem>>, vector<16x64xf32>,
    } else {
    }
    %c0 = arith.constant 0 : index
    %c0_1 = arith.constant 0 : index
    %3 = vector.load %arg6[%c0, %c0_1] : memref<16x64xf32, #tpu.memory_space<vmem>>, vector<16x64xf32>
    %c0_2 = arith.constant 0 : index
    %c0_3 = arith.constant 0 : index
    %4 = vector.load %arg4[%c0_2, %c0_3] : memref<64x128xf32, #tpu.memory_space<vmem>>, vector<64x128xf32>
    %cst = arith.constant dense<0.000000e+00> : vector<16x128xf32>
    %5 = tpu.matmul %3, %4, %cst {dimension_numbers = #tpu.dot_dimension_numbers<[1], [0], [0], [1], [0, 0, 1, 1], [], []>} : vector<16x64xf32>, vector<64x128xf32>, vector<16x128xf32> -> vector<16x128xf32>
    %c0_4 = arith.constant 0 : index
    %c0_5 = arith.constant 0 : index
    %6 = vector.load %arg5[%c0_4, %c0_5] : memref<16x128xf32, #tpu.memory_space<vmem>>, vector<16x128xf32>
    tpu.vector_store %arg5[%c0_4, %c0_5], %5 {strides = array<i32>} : memref<16x128xf32, #tpu.memory_space<vmem>>, vector<16x128xf32>,
    return
  }
  func.func @transform_0(%arg0: i32, %arg1: i32) -> (i32, i32) {
    %c0_i32 = arith.constant 0 : i32
    %c0_i32_0 = arith.constant 0 : i32
    return %arg0, %c0_i32 : i32, i32
  }
  func.func @transform_1(%arg0: i32, %arg1: i32) -> (i32, i32) {
    %c0_i32 = arith.constant 0 : i32
    %c0_i32_0 = arith.constant 0 : i32
    %c0_i32_1 = arith.constant 0 : i32
    return %c0_i32, %c0_i32_0 : i32, i32
  }
  func.func @transform_2(%arg0: i32, %arg1: i32) -> (i32, i32) {
    %c0_i32 = arith.constant 0 : i32
    %c0_i32_0 = arith.constant 0 : i32
    return %c0_i32, %arg1 : i32, i32
  }
  func.func @transform_3(%arg0: i32, %arg1: i32) -> (i32, i32) {
    %c0_i32 = arith.constant 0 : i32
    return %arg0, %arg1 : i32, i32
  }
}

module attributes {stable_mosaic.version = 11 : i64} {
  func.func @_flash_attn_kernel(%arg0: i32, %arg1: i32, %arg2: i32, %arg3: memref<1x1x16x16xf32, #tpu.memory_space<vmem>>, %arg4: memref<1x1x128x16xf32, #tpu.memory_space<vmem>>, %arg5: memref<1x1x128x16xf32, #tpu.memory_space<vmem>>, %arg6: memref<16x128xf32, #tpu.memory_space<vmem>>, %arg7: memref<1x1x16x16xf32, #tpu.memory_space<vmem>>, %arg8: memref<16x1xf32, #tpu.memory_space<vmem>>, %arg9: memref<16x1xf32, #tpu.memory_space<vmem>>, %arg10: memref<16x16xf32, #tpu.memory_space<vmem>>) attributes {dimension_semantics = [#tpu.dimension_semantics<parallel>, #tpu.dimension_semantics<parallel>, #tpu.dimension_semantics<arbitrary>], iteration_bounds = array<i64: 2, 2, 2>, scalar_prefetch = 0 : i64, scratch_operands = 3 : i64, tpu.core_type = #tpu.core_type<tc>, window_params = [{transform_indices = @transform_0, window_bounds = array<i64: 1, 1, 16, 16>}, {transform_indices = @transform_1, window_bounds = array<i64: 1, 1, 128, 16>}, {transform_indices = @transform_2, window_bounds = array<i64: 1, 1, 128, 16>}, {transform_indices = @transform_3, window_bounds = array<i64: 16, 128>}, {transform_indices = @transform_4, window_bounds = array<i64: 1, 1, 16, 16>}]} {
    %c0_i32 = arith.constant 0 : i32
    %0 = arith.cmpi eq, %arg2, %c0_i32 : i32
    %1 = arith.extui %0 : i1 to i32
    %c0_i32_0 = arith.constant 0 : i32
    %2 = arith.cmpi ne, %1, %c0_i32_0 : i32
    scf.if %2 {
      %cst_31 = arith.constant -1.000000e+30 : f32
      %39 = vector.broadcast %cst_31 : f32 to vector<16x1xf32>
      %c0_32 = arith.constant 0 : index
      %c0_33 = arith.constant 0 : index
      %40 = vector.load %arg8[%c0_32, %c0_33] : memref<16x1xf32, #tpu.memory_space<vmem>>, vector<16x1xf32>
      tpu.vector_store %arg8[%c0_32, %c0_33], %39 {strides = array<i32>} : memref<16x1xf32, #tpu.memory_space<vmem>>, vector<16x1xf32>,
      %cst_34 = arith.constant 0.000000e+00 : f32
      %41 = vector.broadcast %cst_34 : f32 to vector<16x1xf32>
      %c0_35 = arith.constant 0 : index
      %c0_36 = arith.constant 0 : index
      %42 = vector.load %arg9[%c0_35, %c0_36] : memref<16x1xf32, #tpu.memory_space<vmem>>, vector<16x1xf32>
      tpu.vector_store %arg9[%c0_35, %c0_36], %41 {strides = array<i32>} : memref<16x1xf32, #tpu.memory_space<vmem>>, vector<16x1xf32>,
      %cst_37 = arith.constant 0.000000e+00 : f32
      %43 = vector.broadcast %cst_37 : f32 to vector<16x16xf32>
      %c0_38 = arith.constant 0 : index
      %c0_39 = arith.constant 0 : index
      %44 = vector.load %arg10[%c0_38, %c0_39] : memref<16x16xf32, #tpu.memory_space<vmem>>, vector<16x16xf32>
      tpu.vector_store %arg10[%c0_38, %c0_39], %43 {strides = array<i32>} : memref<16x16xf32, #tpu.memory_space<vmem>>, vector<16x16xf32>,
    } else {
    }
    %c0 = arith.constant 0 : index
    %c0_1 = arith.constant 0 : index
    %c0_2 = arith.constant 0 : index
    %c0_3 = arith.constant 0 : index
    %3 = vector.load %arg3[%c0, %c0_1, %c0_2, %c0_3] : memref<1x1x16x16xf32, #tpu.memory_space<vmem>>, vector<1x1x16x16xf32>
    %4 = vector.shape_cast %3 : vector<1x1x16x16xf32> to vector<16x16xf32>
    %cst = arith.constant 2.500000e-01 : f32
    %5 = vector.broadcast %cst : f32 to vector<16x16xf32>
    %6 = arith.mulf %4, %5 : vector<16x16xf32>
    %c0_4 = arith.constant 0 : index
    %c0_5 = arith.constant 0 : index
    %c0_6 = arith.constant 0 : index
    %c0_7 = arith.constant 0 : index
    %7 = vector.load %arg4[%c0_4, %c0_5, %c0_6, %c0_7] : memref<1x1x128x16xf32, #tpu.memory_space<vmem>>, vector<1x1x128x16xf32>
    %8 = vector.shape_cast %7 : vector<1x1x128x16xf32> to vector<128x16xf32>
    %c0_8 = arith.constant 0 : index
    %c0_9 = arith.constant 0 : index
    %c0_10 = arith.constant 0 : index
    %c0_11 = arith.constant 0 : index
    %9 = vector.load %arg5[%c0_8, %c0_9, %c0_10, %c0_11] : memref<1x1x128x16xf32, #tpu.memory_space<vmem>>, vector<1x1x128x16xf32>
    %10 = vector.shape_cast %9 : vector<1x1x128x16xf32> to vector<128x16xf32>
    %cst_12 = arith.constant dense<0.000000e+00> : vector<16x128xf32>
    %11 = tpu.matmul %6, %8, %cst_12 {dimension_numbers = #tpu.dot_dimension_numbers<[1], [1], [0], [0], [0, 0, 1, 0], [], []>} : vector<16x16xf32>, vector<128x16xf32>, vector<16x128xf32> -> vector<16x128xf32>
    %c0_13 = arith.constant 0 : index
    %c0_14 = arith.constant 0 : index
    %12 = vector.load %arg6[%c0_13, %c0_14] : memref<16x128xf32, #tpu.memory_space<vmem>>, vector<16x128xf32>
    %13 = arith.addf %11, %12 : vector<16x128xf32>
    %c0_15 = arith.constant 0 : index
    %c0_16 = arith.constant 0 : index
    %14 = vector.load %arg8[%c0_15, %c0_16] : memref<16x1xf32, #tpu.memory_space<vmem>>, vector<16x1xf32>
    %cst_17 = arith.constant dense<0xFF800000> : vector<16xf32>
    %15 = vector.multi_reduction <maximumf>, %13, %cst_17 [1] : vector<16x128xf32> to vector<16xf32>
    %16 = vector.shape_cast %15 : vector<16xf32> to vector<16x1xf32>
    %17 = arith.maximumf %14, %16 : vector<16x1xf32>
    %18 = arith.subf %14, %17 : vector<16x1xf32>
    %19 = math.exp %18 : vector<16x1xf32>
    %20 = vector.broadcast %17 : vector<16x1xf32> to vector<16x128xf32>
    %21 = arith.subf %13, %20 : vector<16x128xf32>
    %22 = math.exp %21 : vector<16x128xf32>
    %c0_18 = arith.constant 0 : index
    %c0_19 = arith.constant 0 : index
    %23 = vector.load %arg9[%c0_18, %c0_19] : memref<16x1xf32, #tpu.memory_space<vmem>>, vector<16x1xf32>
    %24 = arith.mulf %19, %23 : vector<16x1xf32>
    %cst_20 = arith.constant dense<0.000000e+00> : vector<16xf32>
    %25 = vector.multi_reduction <add>, %22, %cst_20 [1] : vector<16x128xf32> to vector<16xf32>
    %26 = vector.shape_cast %25 : vector<16xf32> to vector<16x1xf32>
    %27 = arith.addf %24, %26 : vector<16x1xf32>
    %c0_21 = arith.constant 0 : index
    %c0_22 = arith.constant 0 : index
    %28 = vector.load %arg9[%c0_21, %c0_22] : memref<16x1xf32, #tpu.memory_space<vmem>>, vector<16x1xf32>
    tpu.vector_store %arg9[%c0_21, %c0_22], %27 {strides = array<i32>} : memref<16x1xf32, #tpu.memory_space<vmem>>, vector<16x1xf32>,
    %c0_23 = arith.constant 0 : index
    %c0_24 = arith.constant 0 : index
    %29 = vector.load %arg10[%c0_23, %c0_24] : memref<16x16xf32, #tpu.memory_space<vmem>>, vector<16x16xf32>
    %30 = vector.broadcast %19 : vector<16x1xf32> to vector<16x16xf32>
    %31 = arith.mulf %30, %29 : vector<16x16xf32>
    %cst_25 = arith.constant dense<0.000000e+00> : vector<16x16xf32>
    %32 = tpu.matmul %22, %10, %cst_25 {dimension_numbers = #tpu.dot_dimension_numbers<[1], [0], [0], [1], [0, 0, 1, 1], [], []>} : vector<16x128xf32>, vector<128x16xf32>, vector<16x16xf32> -> vector<16x16xf32>
    %33 = arith.addf %31, %32 : vector<16x16xf32>
    %c0_26 = arith.constant 0 : index
    %c0_27 = arith.constant 0 : index
    %34 = vector.load %arg10[%c0_26, %c0_27] : memref<16x16xf32, #tpu.memory_space<vmem>>, vector<16x16xf32>
    tpu.vector_store %arg10[%c0_26, %c0_27], %33 {strides = array<i32>} : memref<16x16xf32, #tpu.memory_space<vmem>>, vector<16x16xf32>,
    %c0_28 = arith.constant 0 : index
    %c0_29 = arith.constant 0 : index
    %35 = vector.load %arg8[%c0_28, %c0_29] : memref<16x1xf32, #tpu.memory_space<vmem>>, vector<16x1xf32>
    tpu.vector_store %arg8[%c0_28, %c0_29], %17 {strides = array<i32>} : memref<16x1xf32, #tpu.memory_space<vmem>>, vector<16x1xf32>,
    %c1_i32 = arith.constant 1 : i32
    %36 = arith.cmpi eq, %arg2, %c1_i32 : i32
    %37 = arith.extui %36 : i1 to i32
    %c0_i32_30 = arith.constant 0 : i32
    %38 = arith.cmpi ne, %37, %c0_i32_30 : i32
    scf.if %38 {
      %c0_31 = arith.constant 0 : index
      %c0_32 = arith.constant 0 : index
      %39 = vector.load %arg10[%c0_31, %c0_32] : memref<16x16xf32, #tpu.memory_space<vmem>>, vector<16x16xf32>
      %c0_33 = arith.constant 0 : index
      %c0_34 = arith.constant 0 : index
      %40 = vector.load %arg9[%c0_33, %c0_34] : memref<16x1xf32, #tpu.memory_space<vmem>>, vector<16x1xf32>
      %41 = tpu.reciprocal %40 {approx = true} : vector<16x1xf32> -> vector<16x1xf32>
      %42 = vector.broadcast %41 : vector<16x1xf32> to vector<16x16xf32>
      %43 = arith.mulf %39, %42 : vector<16x16xf32>
      %c0_35 = arith.constant 0 : index
      %c0_36 = arith.constant 0 : index
      %c0_37 = arith.constant 0 : index
      %c0_38 = arith.constant 0 : index
      %44 = vector.load %arg7[%c0_35, %c0_36, %c0_37, %c0_38] : memref<1x1x16x16xf32, #tpu.memory_space<vmem>>, vector<1x1x16x16xf32>
      %45 = vector.shape_cast %44 : vector<1x1x16x16xf32> to vector<16x16xf32>
      %46 = vector.shape_cast %43 : vector<16x16xf32> to vector<1x1x16x16xf32>
      tpu.vector_store %arg7[%c0_35, %c0_36, %c0_37, %c0_38], %46 {strides = array<i32>} : memref<1x1x16x16xf32, #tpu.memory_space<vmem>>, vector<1x1x16x16xf32>,
    } else {
    }
    return
  }
  func.func @transform_0(%arg0: i32, %arg1: i32, %arg2: i32) -> (i32, i32, i32, i32) {
    %c0_i32 = arith.constant 0 : i32
    %c0_i32_0 = arith.constant 0 : i32
    %c0_i32_1 = arith.constant 0 : i32
    return %arg0, %arg1, %c0_i32, %c0_i32_0 : i32, i32, i32, i32
  }
  func.func @transform_1(%arg0: i32, %arg1: i32, %arg2: i32) -> (i32, i32, i32, i32) {
    %c0_i32 = arith.constant 0 : i32
    %c0_i32_0 = arith.constant 0 : i32
    return %arg0, %arg1, %arg2, %c0_i32 : i32, i32, i32, i32
  }
  func.func @transform_2(%arg0: i32, %arg1: i32, %arg2: i32) -> (i32, i32, i32, i32) {
    %c0_i32 = arith.constant 0 : i32
    %c0_i32_0 = arith.constant 0 : i32
    return %arg0, %arg1, %arg2, %c0_i32 : i32, i32, i32, i32
  }
  func.func @transform_3(%arg0: i32, %arg1: i32, %arg2: i32) -> (i32, i32) {
    %c0_i32 = arith.constant 0 : i32
    %c0_i32_0 = arith.constant 0 : i32
    return %c0_i32, %arg2 : i32, i32
  }
  func.func @transform_4(%arg0: i32, %arg1: i32, %arg2: i32) -> (i32, i32, i32, i32) {
    %c0_i32 = arith.constant 0 : i32
    %c0_i32_0 = arith.constant 0 : i32
    %c0_i32_1 = arith.constant 0 : i32
    return %arg0, %arg1, %c0_i32, %c0_i32_0 : i32, i32, i32, i32
  }
}

module attributes {stable_mosaic.version = 11 : i64} {
  func.func @_ffn_kernel(%arg0: i32, %arg1: i32, %arg2: memref<16x64xf32, #tpu.memory_space<vmem>>, %arg3: memref<1x64xf32, #tpu.memory_space<vmem>>, %arg4: memref<64x128xf32, #tpu.memory_space<vmem>>, %arg5: memref<64x128xf32, #tpu.memory_space<vmem>>, %arg6: memref<128x64xf32, #tpu.memory_space<vmem>>, %arg7: memref<16x64xf32, #tpu.memory_space<vmem>>, %arg8: memref<16x64xf32, #tpu.memory_space<vmem>>, %arg9: memref<16x64xf32, #tpu.memory_space<vmem>>) attributes {dimension_semantics = [#tpu.dimension_semantics<parallel>, #tpu.dimension_semantics<arbitrary>], iteration_bounds = array<i64: 1, 2>, scalar_prefetch = 0 : i64, scratch_operands = 2 : i64, tpu.core_type = #tpu.core_type<tc>, window_params = [{transform_indices = @transform_0, window_bounds = array<i64: 16, 64>}, {pipeline_mode = #tpu.pipeline_mode<synchronous>, transform_indices = @transform_1, window_bounds = array<i64: 1, 64>}, {transform_indices = @transform_2, window_bounds = array<i64: 64, 128>}, {transform_indices = @transform_3, window_bounds = array<i64: 64, 128>}, {transform_indices = @transform_4, window_bounds = array<i64: 128, 64>}, {transform_indices = @transform_5, window_bounds = array<i64: 16, 64>}]} {
    %c0_i32 = arith.constant 0 : i32
    %0 = arith.cmpi eq, %arg1, %c0_i32 : i32
    %1 = arith.extui %0 : i1 to i32
    %c0_i32_0 = arith.constant 0 : i32
    %2 = arith.cmpi ne, %1, %c0_i32_0 : i32
    scf.if %2 {
      %c0_16 = arith.constant 0 : index
      %c0_17 = arith.constant 0 : index
      %23 = vector.load %arg2[%c0_16, %c0_17] : memref<16x64xf32, #tpu.memory_space<vmem>>, vector<16x64xf32>
      %24 = arith.mulf %23, %23 : vector<16x64xf32>
      %cst_18 = arith.constant dense<0.000000e+00> : vector<16xf32>
      %25 = vector.multi_reduction <add>, %24, %cst_18 [1] : vector<16x64xf32> to vector<16xf32>
      %26 = vector.shape_cast %25 : vector<16xf32> to vector<16x1xf32>
      %cst_19 = arith.constant 6.400000e+01 : f32
      %27 = vector.broadcast %cst_19 : f32 to vector<16x1xf32>
      %28 = arith.divf %26, %27 : vector<16x1xf32>
      %cst_20 = arith.constant 9.99999974E-6 : f32
      %29 = vector.broadcast %cst_20 : f32 to vector<16x1xf32>
      %30 = arith.addf %28, %29 : vector<16x1xf32>
      %31 = math.rsqrt %30 : vector<16x1xf32>
      %32 = vector.broadcast %31 : vector<16x1xf32> to vector<16x64xf32>
      %33 = arith.mulf %23, %32 : vector<16x64xf32>
      %c0_21 = arith.constant 0 : index
      %c0_22 = arith.constant 0 : index
      %34 = vector.load %arg3[%c0_21, %c0_22] : memref<1x64xf32, #tpu.memory_space<vmem>>, vector<1x64xf32>
      %35 = vector.broadcast %34 : vector<1x64xf32> to vector<16x64xf32>
      %36 = arith.mulf %33, %35 : vector<16x64xf32>
      %c0_23 = arith.constant 0 : index
      %c0_24 = arith.constant 0 : index
      %37 = vector.load %arg8[%c0_23, %c0_24] : memref<16x64xf32, #tpu.memory_space<vmem>>, vector<16x64xf32>
      tpu.vector_store %arg8[%c0_23, %c0_24], %36 {strides = array<i32>} : memref<16x64xf32, #tpu.memory_space<vmem>>, vector<16x64xf32>,
      %cst_25 = arith.constant 0.000000e+00 : f32
      %38 = vector.broadcast %cst_25 : f32 to vector<16x64xf32>
      %c0_26 = arith.constant 0 : index
      %c0_27 = arith.constant 0 : index
      %39 = vector.load %arg9[%c0_26, %c0_27] : memref<16x64xf32, #tpu.memory_space<vmem>>, vector<16x64xf32>
      tpu.vector_store %arg9[%c0_26, %c0_27], %38 {strides = array<i32>} : memref<16x64xf32, #tpu.memory_space<vmem>>, vector<16x64xf32>,
    } else {
    }
    %c0 = arith.constant 0 : index
    %c0_1 = arith.constant 0 : index
    %3 = vector.load %arg8[%c0, %c0_1] : memref<16x64xf32, #tpu.memory_space<vmem>>, vector<16x64xf32>
    %c0_2 = arith.constant 0 : index
    %c0_3 = arith.constant 0 : index
    %4 = vector.load %arg4[%c0_2, %c0_3] : memref<64x128xf32, #tpu.memory_space<vmem>>, vector<64x128xf32>
    %cst = arith.constant dense<0.000000e+00> : vector<16x128xf32>
    %5 = tpu.matmul %3, %4, %cst {dimension_numbers = #tpu.dot_dimension_numbers<[1], [0], [0], [1], [0, 0, 1, 1], [], []>} : vector<16x64xf32>, vector<64x128xf32>, vector<16x128xf32> -> vector<16x128xf32>
    %c0_4 = arith.constant 0 : index
    %c0_5 = arith.constant 0 : index
    %6 = vector.load %arg5[%c0_4, %c0_5] : memref<64x128xf32, #tpu.memory_space<vmem>>, vector<64x128xf32>
    %cst_6 = arith.constant dense<0.000000e+00> : vector<16x128xf32>
    %7 = tpu.matmul %3, %6, %cst_6 {dimension_numbers = #tpu.dot_dimension_numbers<[1], [0], [0], [1], [0, 0, 1, 1], [], []>} : vector<16x64xf32>, vector<64x128xf32>, vector<16x128xf32> -> vector<16x128xf32>
    %8 = arith.negf %5 : vector<16x128xf32>
    %9 = math.exp %8 : vector<16x128xf32>
    %cst_7 = arith.constant 1.000000e+00 : f32
    %10 = vector.broadcast %cst_7 : f32 to vector<16x128xf32>
    %11 = arith.addf %10, %9 : vector<16x128xf32>
    %12 = arith.divf %10, %11 : vector<16x128xf32>
    %13 = arith.mulf %5, %12 : vector<16x128xf32>
    %14 = arith.mulf %13, %7 : vector<16x128xf32>
    %c0_8 = arith.constant 0 : index
    %c0_9 = arith.constant 0 : index
    %15 = vector.load %arg9[%c0_8, %c0_9] : memref<16x64xf32, #tpu.memory_space<vmem>>, vector<16x64xf32>
    %c0_10 = arith.constant 0 : index
    %c0_11 = arith.constant 0 : index
    %16 = vector.load %arg6[%c0_10, %c0_11] : memref<128x64xf32, #tpu.memory_space<vmem>>, vector<128x64xf32>
    %cst_12 = arith.constant dense<0.000000e+00> : vector<16x64xf32>
    %17 = tpu.matmul %14, %16, %cst_12 {dimension_numbers = #tpu.dot_dimension_numbers<[1], [0], [0], [1], [0, 0, 1, 1], [], []>} : vector<16x128xf32>, vector<128x64xf32>, vector<16x64xf32> -> vector<16x64xf32>
    %18 = arith.addf %15, %17 : vector<16x64xf32>
    %c0_13 = arith.constant 0 : index
    %c0_14 = arith.constant 0 : index
    %19 = vector.load %arg9[%c0_13, %c0_14] : memref<16x64xf32, #tpu.memory_space<vmem>>, vector<16x64xf32>
    tpu.vector_store %arg9[%c0_13, %c0_14], %18 {strides = array<i32>} : memref<16x64xf32, #tpu.memory_space<vmem>>, vector<16x64xf32>,
    %c1_i32 = arith.constant 1 : i32
    %20 = arith.cmpi eq, %arg1, %c1_i32 : i32
    %21 = arith.extui %20 : i1 to i32
    %c0_i32_15 = arith.constant 0 : i32
    %22 = arith.cmpi ne, %21, %c0_i32_15 : i32
    scf.if %22 {
      %c0_16 = arith.constant 0 : index
      %c0_17 = arith.constant 0 : index
      %23 = vector.load %arg2[%c0_16, %c0_17] : memref<16x64xf32, #tpu.memory_space<vmem>>, vector<16x64xf32>
      %c0_18 = arith.constant 0 : index
      %c0_19 = arith.constant 0 : index
      %24 = vector.load %arg9[%c0_18, %c0_19] : memref<16x64xf32, #tpu.memory_space<vmem>>, vector<16x64xf32>
      %25 = arith.addf %23, %24 : vector<16x64xf32>
      %c0_20 = arith.constant 0 : index
      %c0_21 = arith.constant 0 : index
      %26 = vector.load %arg7[%c0_20, %c0_21] : memref<16x64xf32, #tpu.memory_space<vmem>>, vector<16x64xf32>
      tpu.vector_store %arg7[%c0_20, %c0_21], %25 {strides = array<i32>} : memref<16x64xf32, #tpu.memory_space<vmem>>, vector<16x64xf32>,
    } else {
    }
    return
  }
  func.func @transform_0(%arg0: i32, %arg1: i32) -> (i32, i32) {
    %c0_i32 = arith.constant 0 : i32
    %c0_i32_0 = arith.constant 0 : i32
    return %arg0, %c0_i32 : i32, i32
  }
  func.func @transform_1(%arg0: i32, %arg1: i32) -> (i32, i32) {
    %c0_i32 = arith.constant 0 : i32
    %c0_i32_0 = arith.constant 0 : i32
    %c0_i32_1 = arith.constant 0 : i32
    return %c0_i32, %c0_i32_0 : i32, i32
  }
  func.func @transform_2(%arg0: i32, %arg1: i32) -> (i32, i32) {
    %c0_i32 = arith.constant 0 : i32
    %c0_i32_0 = arith.constant 0 : i32
    return %c0_i32, %arg1 : i32, i32
  }
  func.func @transform_3(%arg0: i32, %arg1: i32) -> (i32, i32) {
    %c0_i32 = arith.constant 0 : i32
    %c0_i32_0 = arith.constant 0 : i32
    return %c0_i32, %arg1 : i32, i32
  }
  func.func @transform_4(%arg0: i32, %arg1: i32) -> (i32, i32) {
    %c0_i32 = arith.constant 0 : i32
    %c0_i32_0 = arith.constant 0 : i32
    return %arg1, %c0_i32 : i32, i32
  }
  func.func @transform_5(%arg0: i32, %arg1: i32) -> (i32, i32) {
    %c0_i32 = arith.constant 0 : i32
    %c0_i32_0 = arith.constant 0 : i32
    return %arg0, %c0_i32 : i32, i32
  }
}

module attributes {stable_mosaic.version = 11 : i64} {
  func.func @_matmul_residual_kernel(%arg0: i32, %arg1: i32, %arg2: i32, %arg3: memref<16x64xf32, #tpu.memory_space<vmem>>, %arg4: memref<64x64xf32, #tpu.memory_space<vmem>>, %arg5: memref<16x64xf32, #tpu.memory_space<vmem>>, %arg6: memref<16x64xf32, #tpu.memory_space<vmem>>, %arg7: memref<16x64xf32, #tpu.memory_space<vmem>>) attributes {dimension_semantics = [#tpu.dimension_semantics<parallel>, #tpu.dimension_semantics<parallel>, #tpu.dimension_semantics<arbitrary>], iteration_bounds = array<i64: 1, 1, 1>, scalar_prefetch = 0 : i64, scratch_operands = 1 : i64, tpu.core_type = #tpu.core_type<tc>, window_params = [{transform_indices = @transform_0, window_bounds = array<i64: 16, 64>}, {transform_indices = @transform_1, window_bounds = array<i64: 64, 64>}, {transform_indices = @transform_2, window_bounds = array<i64: 16, 64>}, {transform_indices = @transform_3, window_bounds = array<i64: 16, 64>}]} {
    %c0_i32 = arith.constant 0 : i32
    %0 = arith.cmpi eq, %arg2, %c0_i32 : i32
    %1 = arith.extui %0 : i1 to i32
    %c0_i32_0 = arith.constant 0 : i32
    %2 = arith.cmpi ne, %1, %c0_i32_0 : i32
    scf.if %2 {
      %cst_10 = arith.constant 0.000000e+00 : f32
      %12 = vector.broadcast %cst_10 : f32 to vector<16x64xf32>
      %c0_11 = arith.constant 0 : index
      %c0_12 = arith.constant 0 : index
      %13 = vector.load %arg7[%c0_11, %c0_12] : memref<16x64xf32, #tpu.memory_space<vmem>>, vector<16x64xf32>
      tpu.vector_store %arg7[%c0_11, %c0_12], %12 {strides = array<i32>} : memref<16x64xf32, #tpu.memory_space<vmem>>, vector<16x64xf32>,
    } else {
    }
    %c0 = arith.constant 0 : index
    %c0_1 = arith.constant 0 : index
    %3 = vector.load %arg7[%c0, %c0_1] : memref<16x64xf32, #tpu.memory_space<vmem>>, vector<16x64xf32>
    %c0_2 = arith.constant 0 : index
    %c0_3 = arith.constant 0 : index
    %4 = vector.load %arg3[%c0_2, %c0_3] : memref<16x64xf32, #tpu.memory_space<vmem>>, vector<16x64xf32>
    %c0_4 = arith.constant 0 : index
    %c0_5 = arith.constant 0 : index
    %5 = vector.load %arg4[%c0_4, %c0_5] : memref<64x64xf32, #tpu.memory_space<vmem>>, vector<64x64xf32>
    %cst = arith.constant dense<0.000000e+00> : vector<16x64xf32>
    %6 = tpu.matmul %4, %5, %cst {dimension_numbers = #tpu.dot_dimension_numbers<[1], [0], [0], [1], [0, 0, 1, 1], [], []>} : vector<16x64xf32>, vector<64x64xf32>, vector<16x64xf32> -> vector<16x64xf32>
    %7 = arith.addf %3, %6 : vector<16x64xf32>
    %c0_6 = arith.constant 0 : index
    %c0_7 = arith.constant 0 : index
    %8 = vector.load %arg7[%c0_6, %c0_7] : memref<16x64xf32, #tpu.memory_space<vmem>>, vector<16x64xf32>
    tpu.vector_store %arg7[%c0_6, %c0_7], %7 {strides = array<i32>} : memref<16x64xf32, #tpu.memory_space<vmem>>, vector<16x64xf32>,
    %c0_i32_8 = arith.constant 0 : i32
    %9 = arith.cmpi eq, %arg2, %c0_i32_8 : i32
    %10 = arith.extui %9 : i1 to i32
    %c0_i32_9 = arith.constant 0 : i32
    %11 = arith.cmpi ne, %10, %c0_i32_9 : i32
    scf.if %11 {
      %c0_10 = arith.constant 0 : index
      %c0_11 = arith.constant 0 : index
      %12 = vector.load %arg5[%c0_10, %c0_11] : memref<16x64xf32, #tpu.memory_space<vmem>>, vector<16x64xf32>
      %c0_12 = arith.constant 0 : index
      %c0_13 = arith.constant 0 : index
      %13 = vector.load %arg7[%c0_12, %c0_13] : memref<16x64xf32, #tpu.memory_space<vmem>>, vector<16x64xf32>
      %14 = arith.addf %12, %13 : vector<16x64xf32>
      %c0_14 = arith.constant 0 : index
      %c0_15 = arith.constant 0 : index
      %15 = vector.load %arg6[%c0_14, %c0_15] : memref<16x64xf32, #tpu.memory_space<vmem>>, vector<16x64xf32>
      tpu.vector_store %arg6[%c0_14, %c0_15], %14 {strides = array<i32>} : memref<16x64xf32, #tpu.memory_space<vmem>>, vector<16x64xf32>,
    } else {
    }
    return
  }
  func.func @transform_0(%arg0: i32, %arg1: i32, %arg2: i32) -> (i32, i32) {
    %c0_i32 = arith.constant 0 : i32
    return %arg0, %arg2 : i32, i32
  }
  func.func @transform_1(%arg0: i32, %arg1: i32, %arg2: i32) -> (i32, i32) {
    %c0_i32 = arith.constant 0 : i32
    return %arg2, %arg1 : i32, i32
  }
  func.func @transform_2(%arg0: i32, %arg1: i32, %arg2: i32) -> (i32, i32) {
    %c0_i32 = arith.constant 0 : i32
    return %arg0, %arg1 : i32, i32
  }
  func.func @transform_3(%arg0: i32, %arg1: i32, %arg2: i32) -> (i32, i32) {
    %c0_i32 = arith.constant 0 : i32
    return %arg0, %arg1 : i32, i32
  }
}

</mosaic_0001>

<bundles_post_ra>
// kernel: transformer_block.4
= control target key start
LH: loop header
LB: loop body
LE: loop exit
PB: predicated region body
PF: predicated region fallthrough
CT: control target
= control target key end

     0   :  { %8 = vsyncpa [#allocation4], 0  ;;  %s241_s12 = smov [#allocation3]   ;;  %s297_s0 = inlined_call_operand.vmem [shape: f32[16,64], index: 0, kind: input, shape index: {}]   ;;  %s298_s1 = inlined_call_operand.vmem [shape: f32[1,64], index: 1, kind: input, shape index: {}]   ;;  %s299_s2 = inlined_call_operand.hbm [shape: f32[64,128], index: 2, kind: input, shape index: {}]   ;;  %s300_s3 = inlined_call_operand.vmem [shape: f32[16,128], index: 3, kind: output, shape index: {}]  }
   0x1   :  { %s18_s13 = sshll.u32 %s241_s12, 4  ;;  %s217_s16 = scalar_lea.hbm %s299_s2, 1024  ;;  %s19_s13 = int_to_ptr.vmem [resolvable:$true] %s18_s13 }
   0x2   :  { %p218_p0 = scmp.ne.s32.totalorder %s299_s2, %s217_s16  ;;  %p221_p1 = scmp.lt.u32.totalorder %s217_s16, %s299_s2 }
   0x4   :  { %p223_p2 = pnand %p221_p1, %p218_p0 }
   0x6   :  { %226 = shalt.err (!%p223_p2)
}
   0x7   :  { %s227_s21 = scalar_lea.vmem %s19_s13, 1024  ;;  %p232_p4 = scmp.lt.s32.totalorder %s19_s13, %s19_s13 }
   0x8   :  { %p228_p3 = scmp.ne.s32.totalorder %s19_s13, %s227_s21  ;;  %p233_p5 = scmp.lt.s32.totalorder %s227_s21, %s227_s21 }
   0xa   :  { %p234_p6 = por %p233_p5, %p232_p4 }
   0xc   :  { %p235_p7 = pnand %p234_p6, %p228_p3 }
   0xe   :  { %238 = shalt.err (!%p235_p7)
}
   0xf   :  { %s242_s22 = smov 128   ;;  %s243_s23 = smov 8  }
  0x10   :  { %24 = dma.hbm_to_vmem [thread:$0]  %s299_s2, 1024, %s19_s13, [#allocation4], %s242_s22, %s242_s22, %s243_s23  }
  0x11   :  { %239 = dma.done.wait [#allocation4], 1024  }
  0x12   :  { %240 = vsyncadd [#allocation4], 4294966272  ;;  %v32_v0 = vld [vmem:[%s297_s0] sm:$0xff]  ;;  %vm36_vm0 = vcmask 523264   ;;  %v33_v1 = vld [vmem:[%s297_s0 + $0x8] sm:$0xff] }
  0x13   :  { %v34_v2 = vmul.f32 %v32_v0, %v32_v0  ;;  %v35_v3 = vmul.f32 %v33_v1, %v33_v1  ;;  %v65_v6 = vld [vmem:[#allocation3] sm:$0xff]  ;;  %v66_v7 = vld [vmem:[#allocation3 + $0x8] sm:$0xff]  ;;  %v67_v9 = vld [vmem:[#allocation3 + $0x10] sm:$0xff] }
  0x14   :  { %v194_v8 = vpack.c.bf16 %v66_v7, %v65_v6  ;;  %v68_v10 = vld [vmem:[#allocation3 + $0x18] sm:$0xff]  ;;  %v69_v12 = vld [vmem:[#allocation3 + $0x20] sm:$0xff]  ;;  %v70_v13 = vld [vmem:[#allocation3 + $0x28] sm:$0xff] }
  0x15   :  { %v37_v4 = vsel %vm36_vm0, %v34_v2, 0.0  ;;  %v40_v5 = vsel %vm36_vm0, %v35_v3, 0.0  ;;  %v198_v11 = vpack.c.bf16 %v68_v10, %v67_v9  ;;  %v202_v14 = vpack.c.bf16 %v70_v13, %v69_v12  ;;  %v71_v15 = vld [vmem:[#allocation3 + $0x30] sm:$0xff]  ;;  %v72_v16 = vld [vmem:[#allocation3 + $0x38] sm:$0xff] }
  0x16   :  { %38 = vadd.xlane.f32.xlu0 %v37_v4  ;;  %195 = vmatprep.subr.bf16.mxu0 %v194_v8  ;;  %v206_v17 = vpack.c.bf16 %v72_v16, %v71_v15  ;;  %v162_v25 = vld [vmem:[%s298_s1] ss:$0 sm:$0xff] }
  0x17   :  { %197 = vmatpush3.bf16.msra.mxu0 %v194_v8 }
  0x18   :  { %199 = vmatprep.subr.bf16.mxu0 %v198_v11 }
  0x1a   :  { %41 = vadd.xlane.f32.xlu0 %v40_v5 }
  0x1b   :  { %201 = vmatpush3.bf16.msra.mxu0 %v198_v11 }
  0x1c   :  { %203 = vmatprep.subr.bf16.mxu0 %v202_v14 }
  0x1f   :  { %205 = vmatpush3.bf16.msra.mxu0 %v202_v14 }
  0x20   :  { %207 = vmatprep.subr.bf16.mxu0 %v206_v17 }
  0x23   :  { %209 = vmatpush3.bf16.msra.mxu0 %v206_v17 }
  0xa3   :  { %v39_v18 = vpop.xlane.xlu0 %38 }
  0xa4   :  { %v44_v19 = vmul.f32 0.015625, %v39_v18 }
  0xa6   :  { %v46_v20 = vadd.f32 1e-05, %v44_v19 }
  0xa7   :  { %v42_v21 = vpop.xlane.xlu0 %41 }
  0xa8   :  { %213 = vrsqrt.f32 %v46_v20  ;;  %v45_v22 = vmul.f32 0.015625, %v42_v21 }
  0xaa   :  { %v47_v23 = vadd.f32 1e-05, %v45_v22 }
  0xac   :  { %215 = vrsqrt.f32 %v47_v23 }
  0xb2   :  { %v214_v24 = vpop.eup %213 }
  0xb3   :  { %v50_v26 = vmul.f32 %v214_v24, %v32_v0 }
  0xb5   :  { %v59_v27 = vmul.f32 %v162_v25, %v50_v26 }
  0xb6   :  { %v216_v28 = vpop.eup %215 }
  0xb7   :  { %61 = vst.msk [vmem:[#allocation2] sm:$0xff] %vm36_vm0, %v59_v27  ;;  %v51_v29 = vmul.f32 %v216_v28, %v33_v1 }
  0xb9   :  { %v60_v30 = vmul.f32 %v162_v25, %v51_v29 }
  0xbb   :  { %62 = vst.msk [vmem:[#allocation2 + $0x8] sm:$0xff] %vm36_vm0, %v60_v30 }
  0xbe   :  { %v63_v31 = vld [vmem:[#allocation2] sm:$0xff] }
  0xbf   :  { %191 = vmatprep.mubr.msk.f32.mxu0 %vm36_vm0, %v63_v31 }
  0xc2   :  { %v64_v32 = vld [vmem:[#allocation2 + $0x8] sm:$0xff] }
  0xc3   :  { %192 = vmatmul.mubr.msk.f32.vlgmr.msra.gmra.mrb[0].mxu0 %vm36_vm0, %v64_v32 }
 0x196   :  { %v193_v33 = vpop.f32.mrb[0].mxu0 }
 0x197   :  { %156 = vst [vmem:[%s300_s3 + $0x8] sm:$0xff] %v193_v33  ;;  %v146_v34 = vpop.f32.mrb[1].mxu0 }
 0x198   :  { %155 = vst [vmem:[%s300_s3] sm:$0xff] %v146_v34 }
 0x199   :  { %161 = vsyncpa [#allocation4], 1 }

// kernel: transformer_block.6
= control target key start
LH: loop header
LB: loop body
LE: loop exit
PB: predicated region body
PF: predicated region fallthrough
CT: control target
= control target key end

     0   :  { %vm18_vm0 = vcmask 523264   ;;  %v182_v3 = vmov 0.0   ;;  %s253_s1 = inlined_call_operand.vmem [shape: f32[64,64], index: 1, kind: input, shape index: {}]   ;;  %s254_s0 = inlined_call_operand.vmem [shape: f32[16,64], index: 0, kind: input, shape index: {}]   ;;  %s255_s2 = inlined_call_operand.vmem [shape: f32[16,64], index: 2, kind: input, shape index: {}]   ;;  %s256_s3 = inlined_call_operand.vmem [shape: f32[16,64], index: 3, kind: output, shape index: {}]  }
   0x1   :  { %v25_v0 = vld [vmem:[%s253_s1] sm:$0xff]  ;;  %v26_v1 = vld [vmem:[%s253_s1 + $0x8] sm:$0xff]  ;;  %v27_v2 = vld [vmem:[%s253_s1 + $0x10] sm:$0xff]  ;;  %20 = vst.msk [vmem:[#allocation2 + $0x8] sm:$0xff] %vm18_vm0, %v182_v3 }
   0x2   :  { %19 = vst.msk [vmem:[#allocation2] sm:$0xff] %vm18_vm0, %v182_v3  ;;  %v165_v4 = vpack.c.bf16 %v26_v1, %v25_v0  ;;  %v28_v5 = vld [vmem:[%s253_s1 + $0x18] sm:$0xff]  ;;  %v29_v7 = vld [vmem:[%s253_s1 + $0x20] sm:$0xff]  ;;  %v30_v8 = vld [vmem:[%s253_s1 + $0x28] sm:$0xff] }
   0x3   :  { %v169_v6 = vpack.c.bf16 %v28_v5, %v27_v2  ;;  %v23_v9 = vld [vmem:[%s254_s0] sm:$0xff]  ;;  %v173_v10 = vpack.c.bf16 %v30_v8, %v29_v7  ;;  %v31_v11 = vld [vmem:[%s253_s1 + $0x30] sm:$0xff]  ;;  %v32_v12 = vld [vmem:[%s253_s1 + $0x38] sm:$0xff] }
   0x4   :  { %166 = vmatprep.subr.bf16.mxu0 %v165_v4  ;;  %162 = vmatprep.mubr.msk.f32.mxu0 %vm18_vm0, %v23_v9  ;;  %v177_v13 = vpack.c.bf16 %v32_v12, %v31_v11  ;;  %v24_v14 = vld [vmem:[%s254_s0 + $0x8] sm:$0xff]  ;;  %v122_v22 = vld [vmem:[%s255_s2] sm:$0xff] }
   0x5   :  { %168 = vmatpush3.bf16.msra.mxu0 %v165_v4  ;;  %v123_v21 = vld [vmem:[%s255_s2 + $0x8] sm:$0xff] }
   0x6   :  { %170 = vmatprep.subr.bf16.mxu0 %v169_v6 }
   0x8   :  { %v22_v15 = vld [vmem:[#allocation2 + $0x8] sm:$0xff] }
   0x9   :  { %172 = vmatpush3.bf16.msra.mxu0 %v169_v6  ;;  %v21_v16 = vld [vmem:[#allocation2] sm:$0xff] }
   0xa   :  { %174 = vmatprep.subr.bf16.mxu0 %v173_v10 }
   0xd   :  { %176 = vmatpush3.bf16.msra.mxu0 %v173_v10 }
   0xe   :  { %178 = vmatprep.subr.bf16.mxu0 %v177_v13 }
  0x11   :  { %180 = vmatpush3.bf16.msra.mxu0 %v177_v13 }
  0x14   :  { %163 = vmatmul.mubr.msk.f32.vlgmr.msra.gmra.mrb[0].mxu0 %vm18_vm0, %v24_v14 }
  0xe7   :  { %v164_v17 = vpop.f32.mrb[0].mxu0 }
  0xe8   :  { %v116_v18 = vadd.f32 %v164_v17, %v22_v15  ;;  %v106_v19 = vpop.f32.mrb[1].mxu0 }
  0xe9   :  { %v115_v20 = vadd.f32 %v106_v19, %v21_v16 }
  0xea   :  { %118 = vst.msk [vmem:[#allocation2 + $0x8] sm:$0xff] %vm18_vm0, %v116_v18 }
  0xeb   :  { %117 = vst.msk [vmem:[#allocation2] sm:$0xff] %vm18_vm0, %v115_v20 }
  0xf1   :  { %v125_v23 = vld [vmem:[#allocation2 + $0x8] sm:$0xff] }
  0xf2   :  { %v127_v24 = vadd.f32 %v125_v23, %v123_v21  ;;  %v124_v25 = vld [vmem:[#allocation2] sm:$0xff] }
  0xf3   :  { %v126_v26 = vadd.f32 %v124_v25, %v122_v22 }
  0xf4   :  { %129 = vst.msk [vmem:[%s256_s3 + $0x8] sm:$0xff] %vm18_vm0, %v127_v24 }
  0xf5   :  { %128 = vst.msk [vmem:[%s256_s3] sm:$0xff] %vm18_vm0, %v126_v26 }

// kernel: transformer_block.7
= control target key start
LH: loop header
LB: loop body
LE: loop exit
PB: predicated region body
PF: predicated region fallthrough
CT: control target
= control target key end

     0   :  { %10 = vsyncpa [#allocation7], 0  ;;  %s1234_s18 = smov 0   ;;  %s1236_s19 = smov 0   ;;  %s1410_s0 = inlined_call_operand.vmem [shape: f32[16,64], index: 0, kind: input, shape index: {}]   ;;  %s1411_s1 = inlined_call_operand.vmem [shape: f32[1,64], index: 1, kind: input, shape index: {}]   ;;  %s1412_s2 = inlined_call_operand.vmem [shape: f32[64,256], index: 2, kind: input, shape index: {}]   ;;  %s1413_s3 = inlined_call_operand.vmem [shape: f32[64,256], index: 3, kind: input, shape index: {}]   ;;  %s1414_s4 = inlined_call_operand.vmem [shape: f32[256,64], index: 4, kind: input, shape index: {}]   ;;  %s1415_s5 = inlined_call_operand.hbm [shape: f32[16,64], index: 5, kind: output, shape index: {}]  }
   0x1   :  { %s1238_s20 = smov 0   ;;  %s1240_s21 = smov 0  }
   0x2   :  { %s1242_s22 = smov 0  }
   0x3 LB: > { %s867_s23 = sadd.s32 4294967295, %s1198_s22   ;;  %s25_s24 = sadd.s32 1, %s1194_s21  ;;  %s1198_s22 = sphi %s1242_s22, %s16_s22   ;;  %s1194_s21 = sphi %s1240_s21, %s1421_s21   ;;  %s1190_s20 = sphi %s1238_s20, %s1420_s20   ;;  %s1186_s19 = sphi %s1236_s19, %s1419_s19   ;;  %s1182_s18 = sphi %s1234_s18, %s1418_s18  }
   0x4   : > { %p26_p0 = scmp.ge.s32.totalorder %s25_s24, 2  ;;  %p89_p1 = scmp.ne.s32.totalorder %s1186_s19, %s1182_s18 }
   0x5   : > { %p90_p2 = scmp.eq.s32.totalorder %s1198_s22, 0  ;;  %s82_s27 = sadd.s32 1, %s1186_s19 }
   0x6   : > { %s1423_s24 = smov (%p26_p0, %s25_s24), 0  ;;  %p870_p5 = scmp.ge.s32.totalorder %s1198_s22, 2 }
   0x7   : > { %p1266_p3 = por %p90_p2, %p89_p1  ;;  %s79_s26 = ssub.s32 %s1194_s21, %s1423_s24 }
   0x8   : > { %p80_p4 = scmp.eq.s32.totalorder %s79_s26, 0  ;;  %205 = sbr.rel (%p870_p5) target bundleno = 31 (0x1f), region = 24 }
   0xa   : > { %s1274_s28 = scalar_select %p80_p4, %s1186_s19, %s82_s27  }
   0xf   : > { %208 = sbr.rel (!%p1266_p3) target bundleno = 23 (0x17), region = 28  ;;  %s210_s29 = sand.u32 (%p1266_p3), 1, %s1186_s19  }
  0x10   : > { %s872_s30 = sshll.u32 (%p1266_p3), %s1194_s21, 3  ;;  %s871_s6 = sshll.u32 (%p1266_p3), %s210_s29, 6 }
  0x11   : > { %s214_s9 = scalar_lea.vmem (%p1266_p3), %s1412_s2, %s872_s30  ;;  %s212_s10 = scalar_lea.vmem (%p1266_p3), [#allocation4], %s871_s6 }
  0x12   : > { %v256_v0 = vld [vmem:[%s214_s9] sm:$0xff] (%p1266_p3)  ;;  %v258_v1 = vld [vmem:[%s214_s9 + $0x10] sm:$0xff] (%p1266_p3) }
  0x13   : > { %v260_v2 = vld [vmem:[%s214_s9 + $0x20] sm:$0xff] (%p1266_p3)  ;;  %257 = vst [vmem:[%s212_s10] sm:$0xff] (%p1266_p3), %v256_v0  ;;  %259 = vst [vmem:[%s212_s10 + $0x8] sm:$0xff] (%p1266_p3), %v258_v1  ;;  %v262_v3 = vld [vmem:[%s214_s9 + $0x30] sm:$0xff] (%p1266_p3) }
  0x14   : > { %261 = vst [vmem:[%s212_s10 + $0x10] sm:$0xff] (%p1266_p3), %v260_v2  ;;  %v264_v4 = vld [vmem:[%s214_s9 + $0x40] sm:$0xff] (%p1266_p3)  ;;  %v266_v5 = vld [vmem:[%s214_s9 + $0x50] sm:$0xff] (%p1266_p3)  ;;  %263 = vst [vmem:[%s212_s10 + $0x18] sm:$0xff] (%p1266_p3), %v262_v3 }
  0x15   : > { %265 = vst [vmem:[%s212_s10 + $0x20] sm:$0xff] (%p1266_p3), %v264_v4  ;;  %267 = vst [vmem:[%s212_s10 + $0x28] sm:$0xff] (%p1266_p3), %v266_v5  ;;  %v268_v6 = vld [vmem:[%s214_s9 + $0x60] sm:$0xff] (%p1266_p3)  ;;  %v270_v7 = vld [vmem:[%s214_s9 + $0x70] sm:$0xff] (%p1266_p3) }
  0x16   : > { %269 = vst [vmem:[%s212_s10 + $0x30] sm:$0xff] %v268_v6  ;;  %271 = vst [vmem:[%s212_s10 + $0x38] sm:$0xff] %v270_v7 }
  0x17 PF: > { %277 = sbr.rel (!%p1266_p3) target bundleno = 31 (0x1f), region = 66  ;;  %s279_s11 = sand.u32 (%p1266_p3), 1, %s1186_s19  }
  0x18   : > { %s874_s12 = sshll.u32 (%p1266_p3), %s1194_s21, 3  ;;  %s873_s13 = sshll.u32 (%p1266_p3), %s279_s11, 6 }
  0x19   : > { %s283_s16 = scalar_lea.vmem (%p1266_p3), %s1413_s3, %s874_s12  ;;  %s281_s17 = scalar_lea.vmem (%p1266_p3), [#allocation5], %s873_s13 }
  0x1a   : > { %v325_v8 = vld [vmem:[%s283_s16] sm:$0xff] (%p1266_p3)  ;;  %v327_v9 = vld [vmem:[%s283_s16 + $0x10] sm:$0xff] (%p1266_p3) }
  0x1b   : > { %v329_v10 = vld [vmem:[%s283_s16 + $0x20] sm:$0xff] (%p1266_p3)  ;;  %326 = vst [vmem:[%s281_s17] sm:$0xff] (%p1266_p3), %v325_v8  ;;  %328 = vst [vmem:[%s281_s17 + $0x8] sm:$0xff] (%p1266_p3), %v327_v9  ;;  %v331_v11 = vld [vmem:[%s283_s16 + $0x30] sm:$0xff] (%p1266_p3) }
  0x1c   : > { %330 = vst [vmem:[%s281_s17 + $0x10] sm:$0xff] (%p1266_p3), %v329_v10  ;;  %v333_v12 = vld [vmem:[%s283_s16 + $0x40] sm:$0xff] (%p1266_p3)  ;;  %v335_v13 = vld [vmem:[%s283_s16 + $0x50] sm:$0xff] (%p1266_p3)  ;;  %332 = vst [vmem:[%s281_s17 + $0x18] sm:$0xff] (%p1266_p3), %v331_v11 }
  0x1d   : > { %334 = vst [vmem:[%s281_s17 + $0x20] sm:$0xff] (%p1266_p3), %v333_v12  ;;  %336 = vst [vmem:[%s281_s17 + $0x28] sm:$0xff] (%p1266_p3), %v335_v13  ;;  %v337_v14 = vld [vmem:[%s283_s16 + $0x60] sm:$0xff] (%p1266_p3)  ;;  %v339_v15 = vld [vmem:[%s283_s16 + $0x70] sm:$0xff] (%p1266_p3) }
  0x1e   : > { %338 = vst [vmem:[%s281_s17 + $0x30] sm:$0xff] %v337_v14  ;;  %340 = vst [vmem:[%s281_s17 + $0x38] sm:$0xff] %v339_v15 }
  0x1f PF: > { %p875_p6 = scmp.ge.s32.totalorder %s1198_s22, 1  ;;  %p354_p7 = scmp.lt.s32.totalorder %s1198_s22, 3 }
  0x21   : > { %p355_p8 = pnand %p875_p6, %p354_p7 }
  0x22   : > { %s361_s25 = sand.u32 (!%p355_p8), 1, %s1182_s18   ;;  %s878_s26 = sshll.u32 (!%p355_p8), %s1190_s20, 4 }
  0x23   : > { %358 = sbr.rel (%p355_p8) target bundleno = 728 (0x2d8), region = 108  ;;  %s876_s27 = sshll.u32 (!%p355_p8), %s361_s25, 6 }
  0x24   : > { %p411_p9 = scmp.lt.s32.totalorder (!%p355_p8), %s878_s26, 31  ;;  %s1300_s8 = scalar_lea.vmem (!%p355_p8), [#allocation4], %s876_s27 }
  0x25   : > { %s1302_s9 = scalar_lea.vmem (!%p355_p8), [#allocation5], %s876_s27  ;;  %p880_p10 = scmp.ne.s32.totalorder (!%p355_p8), %s1190_s20, 0 }
  0x2a   : > { %s1425_s26 = smov (!%p411_p9, %s878_s26), 31  ;;  %420 = sbr.rel (%p880_p10) target bundleno = 213 (0xd5), region = 120 }
  0x2b   : > { %s879_s29 = sshll.u32 %s1425_s26, 3  ;;  %v421_v16 = vld [vmem:[%s1410_s0] sm:$0xff] (!%p880_p10)  ;;  %vm425_vm0 = vcmask (!%p880_p10), 523264   ;;  %v422_v17 = vld [vmem:[%s1410_s0 + $0x8] sm:$0xff] (!%p880_p10)  ;;  %v1200_v19 = vmov (!%p880_p10), 0.0  }
  0x2c   : > { %s1298_s7 = scalar_lea.vmem %s1414_s4, %s879_s29  ;;  %v423_v18 = vmul.f32 (!%p880_p10), %v421_v16, %v421_v16  ;;  %452 = vst.msk [vmem:[#allocation3] sm:$0xff] (!%p880_p10), %vm425_vm0, %v1200_v19  ;;  %453 = vst.msk [vmem:[#allocation3 + $0x8] sm:$0xff] (!%p880_p10), %vm425_vm0, %v1200_v19  ;;  %v424_v20 = vmul.f32 (!%p880_p10), %v422_v17, %v422_v17  ;;  %v881_v30 = vld [vmem:[%s1411_s1] ss:$0 sm:$0xff] (!%p880_p10) }
  0x2e   : > { %v426_v21 = vsel (!%p880_p10), %vm425_vm0, %v423_v18, 0.0  ;;  %v429_v22 = vsel (!%p880_p10), %vm425_vm0, %v424_v20, 0.0 }
  0x2f   : > { %427 = vadd.xlane.f32.xlu0 (!%p880_p10), %v426_v21 }
  0x33   : > { %430 = vadd.xlane.f32.xlu0 %v429_v22 }
  0xbc   : > { %v428_v23 = vpop.xlane.xlu0 %427 }
  0xbd   : > { %v433_v24 = vmul.f32 0.015625, %v428_v23 }
  0xbf   : > { %v435_v25 = vadd.f32 1e-05, %v433_v24 }
  0xc0   : > { %v431_v26 = vpop.xlane.xlu0 %430 }
  0xc1   : > { %1118 = vrsqrt.f32 %v435_v25  ;;  %v434_v27 = vmul.f32 0.015625, %v431_v26 }
  0xc3   : > { %v436_v28 = vadd.f32 1e-05, %v434_v27 }
  0xc5   : > { %1120 = vrsqrt.f32 %v436_v28 }
  0xcb   : > { %v1119_v29 = vpop.eup %1118 }
  0xcc   : > { %v439_v31 = vmul.f32 %v1119_v29, %v421_v16 }
  0xce   : > { %v448_v32 = vmul.f32 %v881_v30, %v439_v31 }
  0xcf   : > { %v1121_v33 = vpop.eup %1120 }
  0xd0   : > { %450 = vst.msk [vmem:[#allocation2] sm:$0xff] %vm425_vm0, %v448_v32  ;;  %v440_v34 = vmul.f32 %v1121_v33, %v422_v17 }
  0xd2   : > { %v449_v35 = vmul.f32 %v881_v30, %v440_v34 }
  0xd4   : > { %451 = vst.msk [vmem:[#allocation2 + $0x8] sm:$0xff] %vm425_vm0, %v449_v35 }
  0xd5 PF: > { %v456_v36 = vld [vmem:[%s1300_s8] sm:$0xff]  ;;  %v457_v37 = vld [vmem:[%s1300_s8 + $0x8] sm:$0xff]  ;;  %v458_v38 = vld [vmem:[%s1300_s8 + $0x10] sm:$0xff]  ;;  %vm464_vm1 = vcmask 523264   ;;  %p888_p11 = scmp.ne.s32.totalorder %s1190_s20, 1 }
  0xd6   : > { %v1004_v39 = vpack.c.bf16 %v457_v37, %v456_v36  ;;  %v459_v40 = vld [vmem:[%s1300_s8 + $0x18] sm:$0xff]  ;;  %v460_v42 = vld [vmem:[%s1300_s8 + $0x20] sm:$0xff]  ;;  %v461_v43 = vld [vmem:[%s1300_s8 + $0x28] sm:$0xff] }
  0xd7   : > { %v1008_v41 = vpack.c.bf16 %v459_v40, %v458_v38  ;;  %v454_v44 = vld [vmem:[#allocation2] sm:$0xff]  ;;  %v1012_v45 = vpack.c.bf16 %v461_v43, %v460_v42  ;;  %v462_v46 = vld [vmem:[%s1300_s8 + $0x30] sm:$0xff]  ;;  %v463_v47 = vld [vmem:[%s1300_s8 + $0x38] sm:$0xff] }
  0xd8   : > { %1005 = vmatprep.subr.bf16.mxu1 %v1004_v39  ;;  %947 = vmatprep.mubr.msk.f32.mxu1 %vm464_vm1, %v454_v44  ;;  %v1016_v48 = vpack.c.bf16 %v463_v47, %v462_v46  ;;  %v546_v49 = vld [vmem:[%s1302_s9] sm:$0xff]  ;;  %v547_v50 = vld [vmem:[%s1302_s9 + $0x8] sm:$0xff]  ;;  %v548_v52 = vld [vmem:[%s1302_s9 + $0x10] sm:$0xff] }
  0xd9   : > { %1007 = vmatpush3.bf16.msra.mxu1 %v1004_v39  ;;  %v1020_v51 = vpack.c.bf16 %v547_v50, %v546_v49  ;;  %v549_v53 = vld [vmem:[%s1302_s9 + $0x18] sm:$0xff]  ;;  %v550_v56 = vld [vmem:[%s1302_s9 + $0x20] sm:$0xff]  ;;  %v551_v57 = vld [vmem:[%s1302_s9 + $0x28] sm:$0xff] }
  0xda   : > { %1009 = vmatprep.subr.bf16.mxu1 %v1008_v41  ;;  %v1024_v55 = vpack.c.bf16 %v549_v53, %v548_v52  ;;  %v1028_v58 = vpack.c.bf16 %v551_v57, %v550_v56  ;;  %v552_v59 = vld [vmem:[%s1302_s9 + $0x30] sm:$0xff]  ;;  %v553_v60 = vld [vmem:[%s1302_s9 + $0x38] sm:$0xff]  ;;  %v647_v62 = vld [vmem:[%s1298_s7] sm:$0xff] }
  0xdb   : > { %v455_v54 = vld [vmem:[#allocation2 + $0x8] sm:$0xff]  ;;  %v1032_v61 = vpack.c.bf16 %v553_v60, %v552_v59  ;;  %v649_v1 = vld [vmem:[%s1298_s7 + $0x10] sm:$0xff]  ;;  %v650_v2 = vld [vmem:[%s1298_s7 + $0x18] sm:$0xff] }
  0xdc   : > { %v648_v63 = vld [vmem:[%s1298_s7 + $0x8] sm:$0xff]  ;;  %v1040_v3 = vpack.c.bf16 %v650_v2, %v649_v1  ;;  %v651_v4 = vld [vmem:[%s1298_s7 + $0x20] sm:$0xff]  ;;  %v653_v7 = vld [vmem:[%s1298_s7 + $0x30] sm:$0xff] }
  0xdd   : > { %1011 = vmatpush3.bf16.msra.mxu1 %v1008_v41  ;;  %v1036_v0 = vpack.c.bf16 %v648_v63, %v647_v62  ;;  %v652_v5 = vld [vmem:[%s1298_s7 + $0x28] sm:$0xff]  ;;  %v654_v8 = vld [vmem:[%s1298_s7 + $0x38] sm:$0xff]  ;;  %v655_v10 = vld [vmem:[%s1298_s7 + $0x40] sm:$0xff] }
  0xde   : > { %1013 = vmatprep.subr.bf16.mxu1 %v1012_v45  ;;  %v1044_v6 = vpack.c.bf16 %v652_v5, %v651_v4  ;;  %v1048_v9 = vpack.c.bf16 %v654_v8, %v653_v7  ;;  %v656_v11 = vld [vmem:[%s1298_s7 + $0x48] sm:$0xff]  ;;  %v657_v13 = vld [vmem:[%s1298_s7 + $0x50] sm:$0xff]  ;;  %v658_v14 = vld [vmem:[%s1298_s7 + $0x58] sm:$0xff] }
  0xdf   : > { %1037 = vmatprep.subr.bf16.mxu0 %v1036_v0  ;;  %v1052_v12 = vpack.c.bf16 %v656_v11, %v655_v10  ;;  %v1056_v15 = vpack.c.bf16 %v658_v14, %v657_v13  ;;  %v659_v16 = vld [vmem:[%s1298_s7 + $0x60] sm:$0xff]  ;;  %v660_v17 = vld [vmem:[%s1298_s7 + $0x68] sm:$0xff]  ;;  %v661_v19 = vld [vmem:[%s1298_s7 + $0x70] sm:$0xff] }
  0xe0   : > { %1039 = vmatpush3.bf16.msra.mxu0 %v1036_v0  ;;  %v1060_v18 = vpack.c.bf16 %v660_v17, %v659_v16  ;;  %v662_v20 = vld [vmem:[%s1298_s7 + $0x78] sm:$0xff]  ;;  %v645_v39 = vld [vmem:[#allocation3] sm:$0xff]  ;;  %v747_v46 = vld [vmem:[%s1410_s0 + $0x8] sm:$0xff] (!%p888_p11) }
  0xe1   : > { %1015 = vmatpush3.bf16.msra.mxu1 %v1012_v45  ;;  %1041 = vmatprep.subr.bf16.mxu0 %v1040_v3  ;;  %v1064_v21 = vpack.c.bf16 %v662_v20, %v661_v19  ;;  %v646_v38 = vld [vmem:[#allocation3 + $0x8] sm:$0xff] }
  0xe2   : > { %1017 = vmatprep.subr.bf16.mxu1 %v1016_v48 }
  0xe4   : > { %1043 = vmatpush3.bf16.msra.mxu0 %v1040_v3 }
  0xe5   : > { %1019 = vmatpush3.bf16.msra.mxu1 %v1016_v48  ;;  %1045 = vmatprep.subr.bf16.mxu0 %v1044_v6 }
  0xe6   : > { %1021 = vmatprep.subr.bf16.mxu1 %v1020_v51 }
  0xe8   : > { %948 = vmatmul.mubr.msk.f32.vlgmr.msra.gmra.mrb[0].mxu1 %vm464_vm1, %v455_v54  ;;  %1047 = vmatpush3.bf16.msra.mxu0 %v1044_v6 }
  0xe9   : > { %1023 = vmatpush3.bf16.msra.mxu1 %v1020_v51  ;;  %966 = vmatprep.mubr.msk.f32.mxu1 %vm464_vm1, %v454_v44  ;;  %v746_v44 = vld [vmem:[%s1410_s0] sm:$0xff] (!%p888_p11) }
  0xea   : > { %1025 = vmatprep.subr.bf16.mxu1 %v1024_v55  ;;  %1049 = vmatprep.subr.bf16.mxu0 %v1048_v9 }
  0xec   : > { %1051 = vmatpush3.bf16.msra.mxu0 %v1048_v9 }
  0xed   : > { %1027 = vmatpush3.bf16.msra.mxu1 %v1024_v55  ;;  %1053 = vmatprep.subr.bf16.mxu0 %v1052_v12 }
  0xee   : > { %1029 = vmatprep.subr.bf16.mxu1 %v1028_v58 }
  0xf0   : > { %1055 = vmatpush3.bf16.msra.mxu0 %v1052_v12 }
  0xf1   : > { %1031 = vmatpush3.bf16.msra.mxu1 %v1028_v58  ;;  %1057 = vmatprep.subr.bf16.mxu0 %v1056_v15 }
  0xf2   : > { %1033 = vmatprep.subr.bf16.mxu1 %v1032_v61 }
  0xf4   : > { %1059 = vmatpush3.bf16.msra.mxu0 %v1056_v15 }
  0xf5   : > { %1035 = vmatpush3.bf16.msra.mxu1 %v1032_v61  ;;  %1061 = vmatprep.subr.bf16.mxu0 %v1060_v18 }
  0xf8   : > { %967 = vmatmul.mubr.msk.f32.vlgmr.msra.gmra.mrb[2].mxu1 %vm464_vm1, %v455_v54  ;;  %1063 = vmatpush3.bf16.msra.mxu0 %v1060_v18 }
  0xf9   : > { %1065 = vmatprep.subr.bf16.mxu0 %v1064_v21 }
  0xfc   : > { %1067 = vmatpush3.bf16.msra.mxu0 %v1064_v21 }
 0x1bb   : > { %v949_v22 = vpop.f32.mrb[0].mxu1 }
 0x1bc   : > { %v887_v23 = vmul.f32 -1.442695, %v949_v22  ;;  %v537_v24 = vpop.f32.mrb[1].mxu1 }
 0x1bd   : > { %v886_v25 = vmul.f32 -1.442695, %v537_v24 }
 0x1be   : > { %1122 = vpow2.f32 %v887_v23 }
 0x1bf   : > { %1124 = vpow2.f32 %v886_v25 }
 0x1c8   : > { %v1123_v26 = vpop.eup %1122 }
 0x1c9   : > { %v1125_v27 = vpop.eup %1124  ;;  %v636_v28 = vadd.f32 1.0, %v1123_v26 }
 0x1ca   : > { %v635_v29 = vadd.f32 1.0, %v1125_v27 }
 0x1cb   : > { %1126 = vrcp.f32 %v636_v28  ;;  %v968_v30 = vpop.f32.mrb[2].mxu1 }
 0x1cc   : > { %1128 = vrcp.f32 %v635_v29  ;;  %v620_v31 = vpop.f32.mrb[3].mxu1 }
 0x1d5   : > { %v1127_v32 = vpop.eup %1126 }
 0x1d6   : > { %v1129_v33 = vpop.eup %1128  ;;  %v642_v34 = vmul.f32 %v1127_v32, %v949_v22 }
 0x1d7   : > { %v641_v35 = vmul.f32 %v1129_v33, %v537_v24 }
 0x1d8   : > { %v644_v36 = vmul.f32 %v968_v30, %v642_v34 }
 0x1d9   : > { %v643_v37 = vmul.f32 %v641_v35, %v620_v31 }
 0x1db   : > { %1001 = vmatprep.mubr.f32.mxu0 %v643_v37 }
 0x1dc   : > { %1002 = vmatmul.mubr.f32.vlgmr.msra.gmra.mrb[0].mxu0 %v644_v36 }
 0x2ad   : > { %745 = sbr.rel (%p888_p11) target bundleno = 702 (0x2be), region = 124 }
 0x2af   : > { %v1003_v40 = vpop.f32.mrb[0].mxu0 }
 0x2b0   : > { %v739_v41 = vadd.f32 %v1003_v40, %v646_v38  ;;  %v729_v42 = vpop.f32.mrb[1].mxu0 }
 0x2b1   : > { %v738_v43 = vadd.f32 %v729_v42, %v645_v39 }
 0x2b2   : > { %741 = vst.msk [vmem:[#allocation3 + $0x8] sm:$0xff] %vm464_vm1, %v739_v41 }
 0x2b3   : > { %740 = vst.msk [vmem:[#allocation3] sm:$0xff] %vm464_vm1, %v738_v43 }
 0x2b9   : > { %v749_v48 = vld [vmem:[#allocation3 + $0x8] sm:$0xff] }
 0x2ba   : > { %v748_v45 = vld [vmem:[#allocation3] sm:$0xff]  ;;  %v751_v49 = vadd.f32 %v749_v48, %v747_v46 }
 0x2bb   : > { %v750_v47 = vadd.f32 %v748_v45, %v746_v44 }
 0x2bc   : > { %753 = vst.msk [vmem:[#allocation6 + $0x8] sm:$0xff] %vm464_vm1, %v751_v49 }
 0x2bd   : > { %752 = vst.msk [vmem:[#allocation6] sm:$0xff] %vm464_vm1, %v750_v47 }
 0x2be PF: > { %p1369_p12 = scmp.eq.s32.totalorder %s867_s23, 1  ;;  %s1201_s26 = smov [#allocation6]  }
 0x2bf   : > { %s763_s27 = sshll.u32 %s1201_s26, 4  ;;  %s764_s27 = int_to_ptr.vmem [resolvable:$true] %s763_s27 }
 0x2c0   : > { %s1130_s29 = scalar_lea.vmem %s764_s27, 256  ;;  %p1137_p2 = scmp.lt.s32.totalorder %s764_s27, %s764_s27 }
 0x2c1   : > { %p1131_p13 = scmp.ne.s32.totalorder %s764_s27, %s1130_s29  ;;  %p1138_p3 = scmp.lt.s32.totalorder %s1130_s29, %s1130_s29 }
 0x2c3   : > { %p1132_p0 = pnand %p1131_p13, %p1369_p12  ;;  %p1139_p4 = por %p1138_p3, %p1137_p2 }
 0x2c5   : > { %p1133_p1 = pneg %p1132_p0 }
 0x2c7   : > { %p1140_p5 = pnand %p1139_p4, %p1133_p1 }
 0x2c9   : > { %1143 = shalt.err (!%p1140_p5)
}
 0x2ca   : > { %s1144_s23 = scalar_lea.hbm %s1415_s5, 256 }
 0x2cb   : > { %p1145_p6 = scmp.ne.s32.totalorder %s1415_s5, %s1144_s23  ;;  %p1150_p9 = scmp.lt.u32.totalorder %s1144_s23, %s1415_s5 }
 0x2cd   : > { %p1146_p7 = pnand %p1145_p6, %p1369_p12 }
 0x2cf   : > { %p1147_p8 = pneg %p1146_p7 }
 0x2d1   : > { %p1152_p10 = pnand %p1150_p9, %p1147_p8 }
 0x2d3   : > { %1155 = shalt.err (!%p1152_p10)
}
 0x2d4   : > { %s1202_s11 = smov 128   ;;  %s1203_s18 = smov 8  }
 0x2d5   : > { %1069 = dma.vmem_to_hbm [thread:$0]  (%p1369_p12), %s764_s27, 256, %s1415_s5, [#allocation7], %s1202_s11, %s1202_s11, %s1203_s18  }
 0x2d6   : > { %1177 = dma.done.wait (%p1369_p12), [#allocation7], 256  }
 0x2d7   : > { %1179 = vsyncadd (%p1369_p12), [#allocation7], 4294967040 }
 0x2d8 PF: > { %s16_s22 = sadd.s32 1, %s1198_s22   ;;  %s1418_s18 = smov %s1186_s19 }
 0x2d9   : > { %p13_p11 = scmp.ge.s32.totalorder %s16_s22, 4   ;;  %s1419_s19 = smov %s1274_s28 }
 0x2da   : > { %s1420_s20 = smov %s1194_s21  ;;  %s1421_s21 = smov %s1423_s24 }
 0x2db   :  { %15 = sbr.rel (!%p13_p11) target bundleno = 3 (0x3), region = 171 }
 0x2e2   :  { %779 = vsyncpa [#allocation7], 1 }
 0x2e3   :  { %781 = vsyncpa [#allocation7 + $0x1], 1 }

// kernel: transformer_block.5
= control target key start
LH: loop header
LB: loop body
LE: loop exit
PB: predicated region body
PF: predicated region fallthrough
CT: control target
= control target key end

     0   :  { %s1557_s0 = inlined_call_operand.vmem [shape: f32[2,2,16,16], index: 0, kind: input, shape index: {}]   ;;  %s1558_s1 = inlined_call_operand.vmem [shape: f32[2,2,256,16], index: 1, kind: input, shape index: {}]   ;;  %s1559_s2 = inlined_call_operand.vmem [shape: f32[2,2,256,16], index: 2, kind: input, shape index: {}]   ;;  %s1560_s3 = inlined_call_operand.vmem [shape: f32[16,256], index: 3, kind: input, shape index: {}]   ;;  %s1561_s4 = inlined_call_operand.vmem [shape: f32[2,2,16,16], index: 4, kind: output, shape index: {}]  }
   0x1   :  { %1564 = sst [smem:[#allocation10_spill]] %s1560_s3 }
   0x2   :  { %s1330_s15 = smov 0   ;;  %s1332_s16 = smov 0  }
   0x3   :  { %s1334_s17 = smov 0   ;;  %s1336_s18 = smov 0  }
   0x4   :  { %s1338_s19 = smov 0   ;;  %s1340_s20 = smov 0  }
   0x5   :  { %s1342_s21 = smov 0   ;;  %s1344_s22 = smov 0  }
   0x6   :  { %s1346_s23 = smov 0  }
   0x7 LB: > { %1565 = sst [smem:[#allocation6_spill]] %s1295_s22  ;;  %s26_s24 = sadd.s32 1, %s1287_s20  ;;  %s1299_s23 = sphi %s1346_s23, %s14_s23   ;;  %s1295_s22 = sphi %s1344_s22, %s1582_s22   ;;  %s1291_s21 = sphi %s1342_s21, %s1581_s21   ;;  %s1287_s20 = sphi %s1340_s20, %s1580_s20   ;;  %s1283_s19 = sphi %s1338_s19, %s1572_s19   ;;  %s1279_s18 = sphi %s1336_s18, %s1579_s18   ;;  %s1275_s17 = sphi %s1334_s17, %s1578_s17   ;;  %s1271_s16 = sphi %s1332_s16, %s1577_s16   ;;  %s1267_s15 = sphi %s1330_s15, %s1576_s15  }
   0x8   : > { %p27_p0 = scmp.ge.s32.totalorder %s26_s24, 2  ;;  %s29_s25 = sadd.s32 1, %s1291_s21 }
   0x9   : > { %s33_s26 = sadd.s32 1, %s1295_s22  ;;  %p135_p1 = scmp.ne.s32.totalorder %s1271_s16, %s1267_s15 }
   0xa   : > { %s1584_s24 = smov (%p27_p0, %s26_s24), 0  ;;  %s1586_s25 = smov (!%p27_p0, %s29_s25), %s1291_s21 }
   0xb   : > { %1566 = sst [smem:[#allocation7_spill]] %s1584_s24  ;;  %s125_s27 = ssub.s32 %s1287_s20, %s1584_s24 }
   0xc   : > { %p136_p2 = scmp.eq.s32.totalorder %s1299_s23, 0  ;;  %p31_p3 = scmp.ge.s32.totalorder %s1586_s25, 2 }
   0xd   : > { %p126_p4 = scmp.eq.s32.totalorder %s125_s27, 0  ;;  %s128_s28 = sadd.s32 1, %s1271_s16 }
   0xe   : > { %p137_p5 = por %p136_p2, %p135_p1  ;;  %s1588_s25 = smov (%p31_p3, %s1586_s25), 0 }
   0xf   : > { %1567 = sst [smem:[#allocation8_spill]] %s1588_s25  ;;  %s1590_s26 = smov (!%p31_p3, %s33_s26), %s1295_s22 }
  0x10   : > { %s1391_s29 = scalar_select %p126_p4, %s1271_s16, %s128_s28  }
  0x11   : > { %p35_p6 = scmp.ge.s32.totalorder %s1590_s26, 2  ;;  %p911_p7 = scmp.ge.s32.totalorder %s1299_s23, 8 }
  0x13   : > { %s1592_s26 = smov (%p35_p6, %s1590_s26), 0  ;;  %189 = sbr.rel (%p911_p7) target bundleno = 37 (0x25), region = 16 }
  0x14   : > { %1568 = sst [smem:[#allocation9_spill]] %s1592_s26 }
  0x1a   : > { %238 = sbr.rel (!%p137_p5) target bundleno = 37 (0x25), region = 32  ;;  %s240_s30 = sand.u32 (%p137_p5), 1, %s1271_s16  }
  0x1b   : > { %s913_s5 = sshll.u32 (%p137_p5), %s1287_s20, 3  ;;  %s912_s6 = sshll.u32 (%p137_p5), %s240_s30, 4 }
  0x1c   : > { %s1569_s3 = sld [smem:[#allocation10_spill]] (%p137_p5)  ;;  %s242_s10 = scalar_lea.vmem (%p137_p5), [#allocation5], %s912_s6 }
  0x22   : > { %s244_s9 = scalar_lea.vmem %s1569_s3, %s913_s5 }
  0x23   : > { %v274_v0 = vld [vmem:[%s244_s9] sm:$0xff]  ;;  %v276_v1 = vld [vmem:[%s244_s9 + $0x10] sm:$0xff] }
  0x24   : > { %275 = vst [vmem:[%s242_s10] sm:$0xff] %v274_v0  ;;  %277 = vst [vmem:[%s242_s10 + $0x8] sm:$0xff] %v276_v1 }
  0x25 PF: > { %p914_p8 = scmp.ge.s32.totalorder %s1299_s23, 1  ;;  %p282_p9 = scmp.lt.s32.totalorder %s1299_s23, 9 }
  0x27   : > { %p283_p10 = pnand %p914_p8, %p282_p9 }
  0x28   : > { %s289_s11 = sand.u32 (!%p283_p10), 1, %s1267_s15   ;;  %p353_p11 = scmp.lt.s32.totalorder (!%p283_p10), %s1283_s19, 1 }
  0x29   : > { %286 = sbr.rel (%p283_p10) target bundleno = 928 (0x3a0), region = 70  ;;  %s1405_s12 = sshll.u32 (!%p283_p10), %s289_s11, 4 }
  0x2a   : > { %p355_p12 = scmp.lt.s32.totalorder (!%p283_p10), %s1279_s18, 1  ;;  %s919_s13 = sshll.u32 (!%p283_p10), %s1275_s17, 4 }
  0x2b   : > { %p367_p13 = scmp.lt.s32.totalorder (!%p283_p10), %s919_s13, 31  ;;  %p930_p0 = scmp.ne.s32.totalorder (!%p283_p10), %s1275_s17, 0 }
  0x30   : > { %s1594_s19 = smov (!%p353_p11, %s1283_s19), 1  ;;  %s1596_s18 = smov (!%p355_p12, %s1279_s18), 1 }
  0x31   : > { %s917_s14 = sshll.u32 %s1594_s19, 2  ;;  %s916_s27 = sshll.u32 %s1596_s18, 1  ;;  %vm403_vm0 = vcmask (!%p930_p0), 7168   ;;  %vm408_vm1 = vcmask (!%p930_p0), 130048   ;;  %v1301_v2 = vmov (!%p930_p0), -1e+30  }
  0x32   : > { %s359_s28 = sadd.s32 %s917_s14, %s916_s27  ;;  %s920_s30 = sshll.u32 %s1596_s18, 5  ;;  %404 = vst.msk [vmem:[#allocation2] sm:$0xff] (!%p930_p0), %vm403_vm0, %v1301_v2  ;;  %405 = vst.msk [vmem:[#allocation2 + $0x8] sm:$0xff] (!%p930_p0), %vm403_vm0, %v1301_v2  ;;  %v1302_v3 = vmov (!%p930_p0), 0.0  }
  0x33   : > { %s918_s5 = sshll.u32 %s359_s28, 3  ;;  %s921_s6 = sshll.u32 %s1594_s19, 6  ;;  %406 = vst.msk [vmem:[#allocation3] sm:$0xff] (!%p930_p0), %vm403_vm0, %v1302_v3  ;;  %407 = vst.msk [vmem:[#allocation3 + $0x8] sm:$0xff] (!%p930_p0), %vm403_vm0, %v1302_v3 }
  0x34   : > { %s1414_s9 = scalar_lea.vmem %s1557_s0, %s918_s5  ;;  %s1419_s11 = scalar_lea.vmem %s1561_s4, %s918_s5  ;;  %409 = vst.msk [vmem:[#allocation4] sm:$0xff] (!%p930_p0), %vm408_vm1, %v1302_v3  ;;  %410 = vst.msk [vmem:[#allocation4 + $0x8] sm:$0xff] (!%p930_p0), %vm408_vm1, %v1302_v3 }
  0x35   : > { %s1598_s13 = smov (!%p367_p13, %s919_s13), 31  ;;  %s291_s28 = scalar_lea.vmem [#allocation5], %s1405_s12 }
  0x36   : > { %s370_s3 = sadd.s32 %s920_s30, %s1598_s13  ;;  %402 = sbr.rel (%p930_p0) target bundleno = 61 (0x3d), region = 78 }
  0x37   : > { %s372_s26 = sadd.s32 %s921_s6, %s370_s3 }
  0x38   : > { %s922_s25 = sshll.u32 %s372_s26, 3 }
  0x39   : > { %s1424_s18 = scalar_lea.vmem %s1558_s1, %s922_s25  ;;  %s1429_s27 = scalar_lea.vmem %s1559_s2, %s922_s25 }
  0x3d PF: > { %v415_v4 = vld [vmem:[%s1424_s18] sm:$0xff]  ;;  %v416_v5 = vld [vmem:[%s1424_s18 + $0x8] sm:$0xff]  ;;  %vm449_vm2 = vcmask 130048   ;;  %v417_v6 = vld [vmem:[%s1424_s18 + $0x10] sm:$0xff]  ;;  %v1303_v39 = vmov 0   ;;  %vm619_vm4 = vcmask 7168  }
  0x3e   : > { %v1058_v7 = vpack.c.bf16 %v416_v5, %v415_v4  ;;  %vm1438_vm3 = vmpackc.low %vm449_vm2, %vm449_vm2  ;;  %v418_v9 = vld [vmem:[%s1424_s18 + $0x18] sm:$0xff]  ;;  %v411_v11 = vld [vmem:[%s1414_s9] sm:$0xff]  ;;  %1214 = vset.pattern.permute.xlu1 %v1303_v39  ;;  %1215 = vset.pattern.permute.xlu0 %v1303_v39  ;;  %p949_p1 = scmp.ne.s32.totalorder %s1275_s17, 1 }
  0x3f   : > { %v1064_v10 = vpack.c.bf16 %v418_v9, %v417_v6  ;;  %v419_v12 = vld [vmem:[%s1424_s18 + $0x20] sm:$0xff]  ;;  %v420_v13 = vld [vmem:[%s1424_s18 + $0x28] sm:$0xff]  ;;  %v413_v14 = vmul.f32 0.25, %v411_v11  ;;  %v421_v16 = vld [vmem:[%s1424_s18 + $0x30] sm:$0xff] }
  0x40   : > { %1060 = vmatprep.subr.msk.bf16.mxu0 %vm1438_vm3, %v1058_v7  ;;  %v1070_v15 = vpack.c.bf16 %v420_v13, %v419_v12  ;;  %v422_v17 = vld [vmem:[%s1424_s18 + $0x38] sm:$0xff]  ;;  %v423_v19 = vld [vmem:[%s1424_s18 + $0x40] sm:$0xff]  ;;  %v424_v20 = vld [vmem:[%s1424_s18 + $0x48] sm:$0xff] }
  0x41   : > { %1063 = vmatpush3.bf16.xpose.msk.msra.mxu0 %vm1438_vm3, %v1058_v7  ;;  %1020 = vmatprep.mubr.msk.f32.mxu0 %vm449_vm2, %v413_v14  ;;  %v1076_v18 = vpack.c.bf16 %v422_v17, %v421_v16  ;;  %v1082_v21 = vpack.c.bf16 %v424_v20, %v423_v19  ;;  %v425_v22 = vld [vmem:[%s1424_s18 + $0x50] sm:$0xff]  ;;  %v426_v23 = vld [vmem:[%s1424_s18 + $0x58] sm:$0xff]  ;;  %v427_v25 = vld [vmem:[%s1424_s18 + $0x60] sm:$0xff] }
  0x42   : > { %1066 = vmatprep.subr.msk.bf16.mxu0 %vm1438_vm3, %v1064_v10  ;;  %v1088_v24 = vpack.c.bf16 %v426_v23, %v425_v22  ;;  %v428_v26 = vld [vmem:[%s1424_s18 + $0x68] sm:$0xff]  ;;  %v429_v28 = vld [vmem:[%s1424_s18 + $0x70] sm:$0xff]  ;;  %v430_v29 = vld [vmem:[%s1424_s18 + $0x78] sm:$0xff] }
  0x43   : > { %v1094_v27 = vpack.c.bf16 %v428_v26, %v427_v25  ;;  %v1100_v30 = vpack.c.bf16 %v430_v29, %v429_v28  ;;  %v412_v31 = vld [vmem:[%s1414_s9 + $0x8] sm:$0xff]  ;;  %v447_v33 = vld [vmem:[%s291_s28] sm:$0xff]  ;;  %v434_v44 = vld [vmem:[%s1429_s27 + $0x18] sm:$0xff] }
  0x44   : > { %v414_v32 = vmul.f32 0.25, %v412_v31  ;;  %v448_v37 = vld [vmem:[%s291_s28 + $0x8] sm:$0xff]  ;;  %v431_v40 = vld [vmem:[%s1429_s27] sm:$0xff]  ;;  %v433_v42 = vld [vmem:[%s1429_s27 + $0x10] sm:$0xff] }
  0x45   : > { %v432_v41 = vld [vmem:[%s1429_s27 + $0x8] sm:$0xff]  ;;  %v1110_v45 = vpack.c.bf16 %v434_v44, %v433_v42  ;;  %v435_v46 = vld [vmem:[%s1429_s27 + $0x20] sm:$0xff]  ;;  %v437_v49 = vld [vmem:[%s1429_s27 + $0x30] sm:$0xff] }
  0x46   : > { %v1106_v43 = vpack.c.bf16 %v432_v41, %v431_v40  ;;  %v436_v47 = vld [vmem:[%s1429_s27 + $0x28] sm:$0xff]  ;;  %v438_v50 = vld [vmem:[%s1429_s27 + $0x38] sm:$0xff]  ;;  %v579_v52 = vld [vmem:[#allocation2] sm:$0xff]  ;;  %v1304_v40 = vmov (!%p949_p1), 0  }
  0x47   : > { %v1114_v48 = vpack.c.bf16 %v436_v47, %v435_v46  ;;  %v1118_v51 = vpack.c.bf16 %v438_v50, %v437_v49  ;;  %v580_v55 = vld [vmem:[#allocation2 + $0x8] sm:$0xff]  ;;  %v439_v57 = vld [vmem:[%s1429_s27 + $0x40] sm:$0xff]  ;;  %v441_v63 = vld [vmem:[%s1429_s27 + $0x50] sm:$0xff] }
  0x48   : > { %1107 = vmatprep.subr.bf16.mxu1 %v1106_v43  ;;  %v440_v58 = vld [vmem:[%s1429_s27 + $0x48] sm:$0xff]  ;;  %v442_v0 = vld [vmem:[%s1429_s27 + $0x58] sm:$0xff]  ;;  %v443_v2 = vld [vmem:[%s1429_s27 + $0x60] sm:$0xff] }
  0x49   : > { %1069 = vmatpush3.bf16.xpose.msk.msra.mxu0 %vm1438_vm3, %v1064_v10  ;;  %1109 = vmatpush3.bf16.msra.mxu1 %v1106_v43  ;;  %v1122_v60 = vpack.c.bf16 %v440_v58, %v439_v57  ;;  %v1126_v1 = vpack.c.bf16 %v442_v0, %v441_v63  ;;  %v444_v3 = vld [vmem:[%s1429_s27 + $0x68] sm:$0xff]  ;;  %v445_v4 = vld [vmem:[%s1429_s27 + $0x70] sm:$0xff]  ;;  %v446_v6 = vld [vmem:[%s1429_s27 + $0x78] sm:$0xff] }
  0x4a   : > { %1072 = vmatprep.subr.msk.bf16.mxu0 %vm1438_vm3, %v1070_v15  ;;  %1111 = vmatprep.subr.bf16.mxu1 %v1110_v45  ;;  %v1130_v5 = vpack.c.bf16 %v444_v3, %v443_v2  ;;  %v1134_v7 = vpack.c.bf16 %v446_v6, %v445_v4  ;;  %v609_v20 = vld [vmem:[#allocation3] sm:$0xff]  ;;  %v610_v23 = vld [vmem:[#allocation3 + $0x8] sm:$0xff]  ;;  %v623_v28 = vld [vmem:[#allocation4 + $0x8] sm:$0xff] }
  0x4d   : > { %1113 = vmatpush3.bf16.msra.mxu1 %v1110_v45 }
  0x4e   : > { %1115 = vmatprep.subr.bf16.mxu1 %v1114_v48 }
  0x51   : > { %1075 = vmatpush3.bf16.xpose.msk.msra.mxu0 %vm1438_vm3, %v1070_v15  ;;  %1117 = vmatpush3.bf16.msra.mxu1 %v1114_v48 }
  0x52   : > { %1078 = vmatprep.subr.msk.bf16.mxu0 %vm1438_vm3, %v1076_v18  ;;  %1119 = vmatprep.subr.bf16.mxu1 %v1118_v51 }
  0x55   : > { %1121 = vmatpush3.bf16.msra.mxu1 %v1118_v51 }
  0x56   : > { %1123 = vmatprep.subr.bf16.mxu1 %v1122_v60 }
  0x59   : > { %1081 = vmatpush3.bf16.xpose.msk.msra.mxu0 %vm1438_vm3, %v1076_v18  ;;  %1125 = vmatpush3.bf16.msra.mxu1 %v1122_v60 }
  0x5a   : > { %1084 = vmatprep.subr.msk.bf16.mxu0 %vm1438_vm3, %v1082_v21  ;;  %1127 = vmatprep.subr.bf16.mxu1 %v1126_v1 }
  0x5d   : > { %1129 = vmatpush3.bf16.msra.mxu1 %v1126_v1 }
  0x5e   : > { %1131 = vmatprep.subr.bf16.mxu1 %v1130_v5 }
  0x61   : > { %1087 = vmatpush3.bf16.xpose.msk.msra.mxu0 %vm1438_vm3, %v1082_v21  ;;  %1133 = vmatpush3.bf16.msra.mxu1 %v1130_v5 }
  0x62   : > { %1090 = vmatprep.subr.msk.bf16.mxu0 %vm1438_vm3, %v1088_v24  ;;  %1135 = vmatprep.subr.bf16.mxu1 %v1134_v7 }
  0x65   : > { %1137 = vmatpush3.bf16.msra.mxu1 %v1134_v7 }
  0x69   : > { %1093 = vmatpush3.bf16.xpose.msk.msra.mxu0 %vm1438_vm3, %v1088_v24 }
  0x6a   : > { %1096 = vmatprep.subr.msk.bf16.mxu0 %vm1438_vm3, %v1094_v27 }
  0x71   : > { %1099 = vmatpush3.bf16.xpose.msk.msra.mxu0 %vm1438_vm3, %v1094_v27 }
  0x72   : > { %1102 = vmatprep.subr.msk.bf16.mxu0 %vm1438_vm3, %v1100_v30 }
  0x79   : > { %1105 = vmatpush3.bf16.xpose.msk.msra.mxu0 %vm1438_vm3, %v1100_v30  ;;  %v622_v30 = vld [vmem:[#allocation4] sm:$0xff] }
  0x80   : > { %1021 = vmatmul.mubr.msk.f32.vlgmr.msra.gmra.mrb[0].mxu0 %vm449_vm2, %v414_v32 }
 0x153   : > { %v1022_v34 = vpop.f32.mrb[0].mxu0 }
 0x154   : > { %v570_v35 = vpop.f32.mrb[1].mxu0  ;;  %v1498_v38 = vadd.f32 %v1022_v34, %v448_v37 }
 0x155   : > { %v1493_v36 = vadd.f32 %v570_v35, %v447_v33 }
 0x157   : > { %581 = vmax.xlane.f32.xlu0 %v1493_v36 }
 0x15b   : > { %583 = vmax.xlane.f32.xlu0 %v1498_v38 }
 0x1e4   : > { %v582_v53 = vpop.xlane.xlu0 %581 }
 0x1e5   : > { %v585_v54 = vmax.f32 %v579_v52, %v582_v53 }
 0x1e7   : > { %v587_v56 = vsub.f32 %v579_v52, %v585_v54  ;;  %715 = vst.msk [vmem:[#allocation2] sm:$0xff] %vm619_vm4, %v585_v54  ;;  %595 = vperm.xlu1 %1214, %v585_v54  }
 0x1e8   : > { %v584_v59 = vpop.xlane.xlu0 %583 }
 0x1e9   : > { %v586_v61 = vmax.f32 %v580_v55, %v584_v59  ;;  %v589_v17 = vmul.f32 1.442695, %v587_v56 }
 0x1eb   : > { %v588_v62 = vsub.f32 %v580_v55, %v586_v61  ;;  %716 = vst.msk [vmem:[#allocation2 + $0x8] sm:$0xff] %vm619_vm4, %v586_v61  ;;  %600 = vperm.xlu1 %1214, %v586_v61  }
 0x1ed   : > { %v591_v16 = vmul.f32 1.442695, %v588_v62 }
 0x266   : > { %v596_v8 = vpop.permute.xlu1 %595 }
 0x267   : > { %v603_v9 = vsub.f32 %v1493_v36, %v596_v8 }
 0x269   : > { %v605_v10 = vmul.f32 1.442695, %v603_v9 }
 0x26a   : > { %v601_v11 = vpop.permute.xlu1 %600 }
 0x26b   : > { %1216 = vpow2.f32 %v605_v10  ;;  %v604_v12 = vsub.f32 %v1498_v38, %v601_v11 }
 0x26d   : > { %v607_v13 = vmul.f32 1.442695, %v604_v12 }
 0x26f   : > { %1218 = vpow2.f32 %v607_v13 }
 0x270   : > { %1220 = vpow2.f32 %v591_v16 }
 0x271   : > { %1222 = vpow2.f32 %v589_v17 }
 0x275   : > { %v1217_v14 = vpop.eup %1216 }
 0x276   : > { %613 = vadd.xlane.f32.xlu0 %v1217_v14  ;;  %1055 = vmatprep.mubr.f32.mxu1 %v1217_v14 }
 0x279   : > { %v1219_v15 = vpop.eup %1218 }
 0x27a   : > { %615 = vadd.xlane.f32.xlu1 %v1219_v15  ;;  %1056 = vmatmul.mubr.f32.vlgmr.msra.gmra.mrb[0].mxu1 %v1219_v15  ;;  %v1221_v18 = vpop.eup %1220 }
 0x27b   : > { %v1223_v19 = vpop.eup %1222  ;;  %v612_v25 = vmul.f32 %v1221_v18, %v610_v23 }
 0x27c   : > { %v611_v21 = vmul.f32 %v1223_v19, %v609_v20 }
 0x28b   : > { %631 = vperm.xlu1 %1214, %v1221_v18  }
 0x28c   : > { %626 = vperm.xlu0 %1215, %v1223_v19  }
 0x290   : > { %1224 = vset.pattern.permute.xlu0 (!%p949_p1), %v1304_v40 }
 0x303   : > { %v614_v22 = vpop.xlane.xlu0 %613 }
 0x304   : > { %v617_v24 = vadd.f32 %v614_v22, %v611_v21 }
 0x306   : > { %620 = vst.msk [vmem:[#allocation3] sm:$0xff] %vm619_vm4, %v617_v24 }
 0x307   : > { %v616_v26 = vpop.xlane.xlu1 %615 }
 0x308   : > { %v618_v27 = vadd.f32 %v616_v26, %v612_v25 }
 0x30a   : > { %621 = vst.msk [vmem:[#allocation3 + $0x8] sm:$0xff] %vm619_vm4, %v618_v27 }
 0x30b   : > { %v632_v29 = vpop.permute.xlu1 %631  ;;  %v627_v31 = vpop.permute.xlu0 %626 }
 0x30c   : > { %v635_v32 = vmul.f32 %v632_v29, %v623_v28  ;;  %v634_v33 = vmul.f32 %v627_v31, %v622_v30 }
 0x30d   : > { %v723_v38 = vld [vmem:[#allocation3] sm:$0xff] (!%p949_p1) }
 0x30e   : > { %1225 = vrcp.f32 (!%p949_p1), %v723_v38 }
 0x311   : > { %v724_v39 = vld [vmem:[#allocation3 + $0x8] sm:$0xff] (!%p949_p1) }
 0x312   : > { %1227 = vrcp.f32 (!%p949_p1), %v724_v39 }
 0x318   : > { %v1226_v41 = vpop.eup (!%p949_p1), %1225 }
 0x319   : > { %729 = vperm.xlu0 (!%p949_p1), %1224, %v1226_v41  }
 0x31c   : > { %v1228_v42 = vpop.eup (!%p949_p1), %1227 }
 0x31d   : > { %734 = vperm.xlu0 (!%p949_p1), %1224, %v1228_v42  }
 0x34b   : > { %720 = sbr.rel (%p949_p1) target bundleno = 928 (0x3a0), region = 82 }
 0x34d   : > { %v1057_v34 = vpop.f32.mrb[0].mxu1 }
 0x34e   : > { %v712_v35 = vadd.f32 %v1057_v34, %v635_v32  ;;  %v702_v36 = vpop.f32.mrb[1].mxu1 }
 0x34f   : > { %v711_v37 = vadd.f32 %v702_v36, %v634_v33 }
 0x350   : > { %714 = vst.msk [vmem:[#allocation4 + $0x8] sm:$0xff] %vm449_vm2, %v712_v35 }
 0x351   : > { %713 = vst.msk [vmem:[#allocation4] sm:$0xff] %vm449_vm2, %v711_v37 }
 0x357   : > { %v722_v46 = vld [vmem:[#allocation4 + $0x8] sm:$0xff] }
 0x358   : > { %v721_v43 = vld [vmem:[#allocation4] sm:$0xff] }
 0x398   : > { %v730_v44 = vpop.permute.xlu0 %729 }
 0x399   : > { %v737_v45 = vmul.f32 %v730_v44, %v721_v43 }
 0x39b   : > { %739 = vst.msk [vmem:[%s1419_s11] sm:$0xff] %vm449_vm2, %v737_v45 }
 0x39c   : > { %v735_v47 = vpop.permute.xlu0 %734 }
 0x39d   : > { %v738_v48 = vmul.f32 %v735_v47, %v722_v46 }
 0x39f   : > { %740 = vst.msk [vmem:[%s1419_s11 + $0x8] sm:$0xff] %vm449_vm2, %v738_v48 }
 0x3a0 PF: > { %s14_s23 = sadd.s32 1, %s1299_s23   ;;  %s1572_s19 = sld [smem:[#allocation6_spill]] }
 0x3a1   : > { %p11_p2 = scmp.ge.s32.totalorder %s14_s23, 10   ;;  %s1573_s3 = sld [smem:[#allocation7_spill]] }
 0x3a2   : > { %s1574_s22 = sld [smem:[#allocation8_spill]]  ;;  %s1575_s24 = sld [smem:[#allocation9_spill]] }
 0x3a3   : > { %s1576_s15 = smov %s1271_s16  ;;  %s1577_s16 = smov %s1391_s29 }
 0x3a4   : > { %s1578_s17 = smov %s1287_s20  ;;  %s1579_s18 = smov %s1291_s21 }
 0x3a5   :  { %13 = sbr.rel (!%p11_p2) target bundleno = 7 (0x7), region = 126 }
 0x3a7   : > { %s1580_s20 = smov %s1573_s3 }
 0x3a8   : > { %s1581_s21 = smov %s1574_s22  ;;  %s1582_s22 = smov %s1575_s24 }

</bundles_post_ra>
